<compile_context>
chip_gen: v5e
topology: v5e:2x2
jax: 0.10.0
libtpu: 0.0.40
codegen_flags: <defaults>
</compile_context>

<pallas_src>
import functools

import jax
import jax.numpy as jnp
from jax import lax
from jax.experimental import pallas as pl
from jax.experimental.pallas import tpu as pltpu  # noqa: F401  (TPU backend)

# Keep f32 matmuls at full f32 accuracy everywhere (kernel, prework, reference)
# so the hoisted/refactored math matches the un-hoisted reference tightly.
jax.config.update("jax_default_matmul_precision", "highest")


# ----------------------------------------------------------------------------
# Pallas kernel: the whole GRU-D recurrence in one invocation.
# All arrays are whole-array VMEM blocks (no grid); hidden state is carried in
# registers; hidden-state sequence is written time-reversed into the output.
# ----------------------------------------------------------------------------
def _grud_recurrence_kernel(dh_ref,   # (T, B, H)  precomputed decay exp(-relu(gamma_h))
                            bzr_ref,  # (B, 2H)    effective bias for fused z|r gates
                            bh_ref,   # (B, H)     effective bias for h_tilde
                            wzr_ref,  # (H, 2H)    fused h-weights for z|r gates
                            whh_ref,  # (H, H)     h-weight for h_tilde
                            hs_ref,   # (T, B, H)  output: hidden states, reversed time
                            *, T, H):
    wzr = wzr_ref[...]
    whh = whh_ref[...]
    bzr = bzr_ref[...]
    bh = bh_ref[...]
    B = bh.shape[0]

    h = jnp.zeros((B, H), jnp.float32)
    # T static & tiny -> static loop (== fully-unrolled fori_loop, but with
    # compile-time indices: no dynamic slicing, full LLO scheduler visibility).
    for step in range(T):
        h = dh_ref[step] * h                                   # decay (h==0 at step 0)
        zr = jax.nn.sigmoid(
            jnp.dot(h, wzr, preferred_element_type=jnp.float32) + bzr)
        z = zr[:, :H]
        r = zr[:, H:]
        h_tilde = jnp.tanh(
            jnp.dot(r * h, whh, preferred_element_type=jnp.float32) + bh)
        h = (1.0 - z) * h + z * h_tilde
        hs_ref[T - 1 - step] = h                               # GRUD prepends newest state


# ----------------------------------------------------------------------------
# Wrapper: fold time-invariant terms once, run the kernel, apply final Linear.
# ----------------------------------------------------------------------------
@jax.jit
def grud_decoder_forward(C, t, mask, params):
    """Pallas implementation of GRUDDecoder.forward (mask arg is ignored)."""
    del mask  # GRUDDecoder overwrites mask with ones_like(x)
    T, B = t.shape[0], t.shape[1]
    H = C.shape[1]

    C = C.astype(jnp.float32)
    W_z, b_z = params["W_z"], params["b_z"]
    W_r, b_r = params["W_r"], params["b_r"]
    W_h, b_h = params["W_h"], params["b_h"]
    W_gh, b_gh = params["W_gh"], params["b_gh"]

    # --- GRU-D input prep with mask == 1: delta rows are a scalar dt ---------
    t0 = t[:, :, 0:1].astype(jnp.float32)                          # (T, B, 1)
    dt = jnp.concatenate(
        [jnp.zeros((1, B, 1), jnp.float32), t0[1:] - t0[:-1]], axis=0)

    # gamma_h(delta) = dt * colsum(W_gh) + b_gh ; decay precomputed for all T.
    gamma_h = dt * jnp.sum(W_gh, axis=0)[None, None, :] + b_gh[None, :, :]
    delta_h = jnp.exp(-jnp.maximum(0.0, gamma_h))                  # (T, B, H)

    # --- fold x == C and ones-mask blocks into effective biases --------------
    eff_b_z = C @ W_z[:H] + jnp.sum(W_z[2 * H:], axis=0)[None, :] + b_z
    eff_b_r = C @ W_r[:H] + jnp.sum(W_r[2 * H:], axis=0)[None, :] + b_r
    eff_b_h = C @ W_h[:H] + jnp.sum(W_h[2 * H:], axis=0)[None, :] + b_h
    W_zr = jnp.concatenate([W_z[H:2 * H], W_r[H:2 * H]], axis=1)   # (H, 2H)
    eff_b_zr = jnp.concatenate([eff_b_z, eff_b_r], axis=1)         # (B, 2H)
    W_hh = W_h[H:2 * H]                                            # (H, H)

    # --- single pallas_call: whole arrays as VMEM blocks, no grid ------------
    hs_rev = pl.pallas_call(
        functools.partial(_grud_recurrence_kernel, T=T, H=H),
        out_shape=jax.ShapeDtypeStruct((T, B, H), jnp.float32),
    )(delta_h, eff_b_zr, eff_b_h, W_zr, W_hh)

    # Final Linear batched over all T at once (trivially parallel).
    return hs_rev @ params["W_lin"] + params["b_lin"]              # (T, B, O)


# ----------------------------------------------------------------------------
# Pure-JAX reference (original un-hoisted math, lax.scan) for verification.
# ----------------------------------------------------------------------------
def grud_decoder_reference(C, t, params):
    T, B = t.shape[0], t.shape[1]
    H = C.shape[1]
    x = jnp.broadcast_to(C[None, :, :], (T, B, H)).astype(jnp.float32)
    mask = jnp.ones_like(x)
    tt = jnp.broadcast_to(t[:, :, 0:1], (T, B, H)).astype(jnp.float32)
    delta = jnp.concatenate(
        [jnp.zeros((1, B, H), jnp.float32), tt[1:] - tt[:-1]], axis=0)

    def step(h, inp):
        xi, di, mi = inp
        gamma_h = di @ params["W_gh"] + params["b_gh"]
        delta_h = jnp.exp(-jnp.maximum(0.0, gamma_h))
        h = delta_h * h
        comb = jnp.concatenate([xi, h, mi], axis=1)
        z = jax.nn.sigmoid(comb @ params["W_z"] + params["b_z"])
        r = jax.nn.sigmoid(comb @ params["W_r"] + params["b_r"])
        comb_r = jnp.concatenate([xi, r * h, mi], axis=1)
        h_tilde = jnp.tanh(comb_r @ params["W_h"] + params["b_h"])
        h = (1.0 - z) * h + z * h_tilde
        return h, h

    h0 = jnp.zeros((B, H), jnp.float32)
    _, hs = lax.scan(step, h0, (x, delta, mask))       # (T, B, H), forward
    hs_rev = hs[::-1]                                   # GRUD prepends hidden
    return hs_rev @ params["W_lin"] + params["b_lin"]   # (T, B, O)


# ----------------------------------------------------------------------------
# Deterministic parameter init (PyTorch nn.Linear-style uniform(-s, s)).
# Weights stored pre-transposed: y = x @ W + b.
# ----------------------------------------------------------------------------
def init_params(key, hidden_dim, output_dim):
    H, O = hidden_dim, output_dim
    ks = jax.random.split(key, 10)

    def lin(kw, kb, fan_in, fan_out):
        s = 1.0 / jnp.sqrt(fan_in)
        w = jax.random.uniform(kw, (fan_in, fan_out), jnp.float32, -s, s)
        b = jax.random.uniform(kb, (1, fan_out), jnp.float32, -s, s)
        return w, b

    W_z, b_z = lin(ks[0], ks[1], 3 * H, H)
    W_r, b_r = lin(ks[2], ks[3], 3 * H, H)
    W_h, b_h = lin(ks[4], ks[5], 3 * H, H)
    W_gh, b_gh = lin(ks[6], ks[7], H, H)
    W_lin, b_lin = lin(ks[8], ks[9], H, O)
    # gamma_x_l (FilterLinear) params are not created: with mask == 1 they
    # provably do not affect the output of GRUDDecoder.forward.
    return dict(
        W_z=W_z, b_z=b_z, W_r=W_r, b_r=b_r, W_h=W_h, b_h=b_h,
        W_gh=W_gh, b_gh=b_gh, W_lin=W_lin, b_lin=b_lin,
    )


if __name__ == "__main__":
    hidden_dim = 32      # H
    output_dim = 8       # O
    max_seq_len = 8      # T
    B = 4                # number of units (batch)
    Dt = 3               # time-feature dim (only column 0 is used)

    key = jax.random.PRNGKey(0)
    k_c, k_t, k_p, k_m = jax.random.split(key, 4)

    C = jax.random.normal(k_c, (B, hidden_dim), jnp.float32)
    # monotonically increasing timestamps per unit, time-major (T, B, Dt)
    t = jnp.cumsum(
        jax.random.uniform(k_t, (max_seq_len, B, Dt), jnp.float32, 0.1, 1.0),
        axis=0,
    )
    mask_in = jax.random.bernoulli(k_m, 0.5, (max_seq_len, B, hidden_dim))  # ignored

    params = init_params(k_p, hidden_dim, output_dim)

    out = grud_decoder_forward(C, t, mask_in, params)
    out = jax.block_until_ready(out)

    ref = grud_decoder_reference(C, t, params)
    assert out.shape == (max_seq_len, B, output_dim), out.shape
    max_err = float(jnp.max(jnp.abs(out - ref)))
    assert jnp.allclose(out, ref, rtol=1e-4, atol=1e-4), max_err
    print("KERNEL_OK")
</pallas_src>

<mosaic_0001>
module attributes {stable_mosaic.version = 11 : i64} {
  func.func @_grud_recurrence_kernel(%arg0: memref<8x4x32xf32, #tpu.memory_space<vmem>>, %arg1: memref<4x64xf32, #tpu.memory_space<vmem>>, %arg2: memref<4x32xf32, #tpu.memory_space<vmem>>, %arg3: memref<32x64xf32, #tpu.memory_space<vmem>>, %arg4: memref<32x32xf32, #tpu.memory_space<vmem>>, %arg5: memref<8x4x32xf32, #tpu.memory_space<vmem>>) attributes {dimension_semantics = [], scalar_prefetch = 0 : i64, scratch_operands = 0 : i64, tpu.core_type = #tpu.core_type<tc>} {
    %c0 = arith.constant 0 : index
    %c0_0 = arith.constant 0 : index
    %0 = vector.load %arg3[%c0, %c0_0] : memref<32x64xf32, #tpu.memory_space<vmem>>, vector<32x64xf32>
    %c0_1 = arith.constant 0 : index
    %c0_2 = arith.constant 0 : index
    %1 = vector.load %arg4[%c0_1, %c0_2] : memref<32x32xf32, #tpu.memory_space<vmem>>, vector<32x32xf32>
    %c0_3 = arith.constant 0 : index
    %c0_4 = arith.constant 0 : index
    %2 = vector.load %arg1[%c0_3, %c0_4] : memref<4x64xf32, #tpu.memory_space<vmem>>, vector<4x64xf32>
    %c0_5 = arith.constant 0 : index
    %c0_6 = arith.constant 0 : index
    %3 = vector.load %arg2[%c0_5, %c0_6] : memref<4x32xf32, #tpu.memory_space<vmem>>, vector<4x32xf32>
    %cst = arith.constant 0.000000e+00 : f32
    %4 = vector.broadcast %cst : f32 to vector<4x32xf32>
    %c0_7 = arith.constant 0 : index
    %c0_8 = arith.constant 0 : index
    %c0_9 = arith.constant 0 : index
    %5 = vector.load %arg0[%c0_7, %c0_8, %c0_9] : memref<8x4x32xf32, #tpu.memory_space<vmem>>, vector<1x4x32xf32>
    %6 = vector.shape_cast %5 : vector<1x4x32xf32> to vector<4x32xf32>
    %7 = arith.mulf %6, %4 : vector<4x32xf32>
    %cst_10 = arith.constant dense<0.000000e+00> : vector<4x64xf32>
    %8 = tpu.matmul %7, %0, %cst_10 {dimension_numbers = #tpu.dot_dimension_numbers<[1], [0], [0], [1], [0, 0, 1, 1], [], []>, precision = #tpu.contract_precision<fp32>} : vector<4x32xf32>, vector<32x64xf32>, vector<4x64xf32> -> vector<4x64xf32>
    %9 = arith.addf %8, %2 : vector<4x64xf32>
    %10 = arith.negf %9 : vector<4x64xf32>
    %11 = math.exp %10 : vector<4x64xf32>
    %cst_11 = arith.constant 1.000000e+00 : f32
    %12 = vector.broadcast %cst_11 : f32 to vector<4x64xf32>
    %13 = arith.addf %12, %11 : vector<4x64xf32>
    %14 = arith.divf %12, %13 : vector<4x64xf32>
    %15 = vector.extract_strided_slice %14 {offsets = [0, 0], sizes = [4, 32], strides = [1, 1]} : vector<4x64xf32> to vector<4x32xf32>
    %16 = vector.extract_strided_slice %14 {offsets = [0, 32], sizes = [4, 32], strides = [1, 1]} : vector<4x64xf32> to vector<4x32xf32>
    %17 = arith.mulf %16, %7 : vector<4x32xf32>
    %cst_12 = arith.constant dense<0.000000e+00> : vector<4x32xf32>
    %18 = tpu.matmul %17, %1, %cst_12 {dimension_numbers = #tpu.dot_dimension_numbers<[1], [0], [0], [1], [0, 0, 1, 1], [], []>, precision = #tpu.contract_precision<fp32>} : vector<4x32xf32>, vector<32x32xf32>, vector<4x32xf32> -> vector<4x32xf32>
    %19 = arith.addf %18, %3 : vector<4x32xf32>
    %20 = math.tanh %19 : vector<4x32xf32>
    %cst_13 = arith.constant 1.000000e+00 : f32
    %21 = vector.broadcast %cst_13 : f32 to vector<4x32xf32>
    %22 = arith.subf %21, %15 : vector<4x32xf32>
    %23 = arith.mulf %22, %7 : vector<4x32xf32>
    %24 = arith.mulf %15, %20 : vector<4x32xf32>
    %25 = arith.addf %23, %24 : vector<4x32xf32>
    %c7 = arith.constant 7 : index
    %c0_14 = arith.constant 0 : index
    %c0_15 = arith.constant 0 : index
    %26 = vector.load %arg5[%c7, %c0_14, %c0_15] : memref<8x4x32xf32, #tpu.memory_space<vmem>>, vector<1x4x32xf32>
    %27 = vector.shape_cast %26 : vector<1x4x32xf32> to vector<4x32xf32>
    %28 = vector.shape_cast %25 : vector<4x32xf32> to vector<1x4x32xf32>
    tpu.vector_store %arg5[%c7, %c0_14, %c0_15], %28 {strides = array<i32>} : memref<8x4x32xf32, #tpu.memory_space<vmem>>, vector<1x4x32xf32>,
    %c1 = arith.constant 1 : index
    %c0_16 = arith.constant 0 : index
    %c0_17 = arith.constant 0 : index
    %29 = vector.load %arg0[%c1, %c0_16, %c0_17] : memref<8x4x32xf32, #tpu.memory_space<vmem>>, vector<1x4x32xf32>
    %30 = vector.shape_cast %29 : vector<1x4x32xf32> to vector<4x32xf32>
    %31 = arith.mulf %30, %25 : vector<4x32xf32>
    %cst_18 = arith.constant dense<0.000000e+00> : vector<4x64xf32>
    %32 = tpu.matmul %31, %0, %cst_18 {dimension_numbers = #tpu.dot_dimension_numbers<[1], [0], [0], [1], [0, 0, 1, 1], [], []>, precision = #tpu.contract_precision<fp32>} : vector<4x32xf32>, vector<32x64xf32>, vector<4x64xf32> -> vector<4x64xf32>
    %33 = arith.addf %32, %2 : vector<4x64xf32>
    %34 = arith.negf %33 : vector<4x64xf32>
    %35 = math.exp %34 : vector<4x64xf32>
    %cst_19 = arith.constant 1.000000e+00 : f32
    %36 = vector.broadcast %cst_19 : f32 to vector<4x64xf32>
    %37 = arith.addf %36, %35 : vector<4x64xf32>
    %38 = arith.divf %36, %37 : vector<4x64xf32>
    %39 = vector.extract_strided_slice %38 {offsets = [0, 0], sizes = [4, 32], strides = [1, 1]} : vector<4x64xf32> to vector<4x32xf32>
    %40 = vector.extract_strided_slice %38 {offsets = [0, 32], sizes = [4, 32], strides = [1, 1]} : vector<4x64xf32> to vector<4x32xf32>
    %41 = arith.mulf %40, %31 : vector<4x32xf32>
    %cst_20 = arith.constant dense<0.000000e+00> : vector<4x32xf32>
    %42 = tpu.matmul %41, %1, %cst_20 {dimension_numbers = #tpu.dot_dimension_numbers<[1], [0], [0], [1], [0, 0, 1, 1], [], []>, precision = #tpu.contract_precision<fp32>} : vector<4x32xf32>, vector<32x32xf32>, vector<4x32xf32> -> vector<4x32xf32>
    %43 = arith.addf %42, %3 : vector<4x32xf32>
    %44 = math.tanh %43 : vector<4x32xf32>
    %cst_21 = arith.constant 1.000000e+00 : f32
    %45 = vector.broadcast %cst_21 : f32 to vector<4x32xf32>
    %46 = arith.subf %45, %39 : vector<4x32xf32>
    %47 = arith.mulf %46, %31 : vector<4x32xf32>
    %48 = arith.mulf %39, %44 : vector<4x32xf32>
    %49 = arith.addf %47, %48 : vector<4x32xf32>
    %c6 = arith.constant 6 : index
    %c0_22 = arith.constant 0 : index
    %c0_23 = arith.constant 0 : index
    %50 = vector.load %arg5[%c6, %c0_22, %c0_23] : memref<8x4x32xf32, #tpu.memory_space<vmem>>, vector<1x4x32xf32>
    %51 = vector.shape_cast %50 : vector<1x4x32xf32> to vector<4x32xf32>
    %52 = vector.shape_cast %49 : vector<4x32xf32> to vector<1x4x32xf32>
    tpu.vector_store %arg5[%c6, %c0_22, %c0_23], %52 {strides = array<i32>} : memref<8x4x32xf32, #tpu.memory_space<vmem>>, vector<1x4x32xf32>,
    %c2 = arith.constant 2 : index
    %c0_24 = arith.constant 0 : index
    %c0_25 = arith.constant 0 : index
    %53 = vector.load %arg0[%c2, %c0_24, %c0_25] : memref<8x4x32xf32, #tpu.memory_space<vmem>>, vector<1x4x32xf32>
    %54 = vector.shape_cast %53 : vector<1x4x32xf32> to vector<4x32xf32>
    %55 = arith.mulf %54, %49 : vector<4x32xf32>
    %cst_26 = arith.constant dense<0.000000e+00> : vector<4x64xf32>
    %56 = tpu.matmul %55, %0, %cst_26 {dimension_numbers = #tpu.dot_dimension_numbers<[1], [0], [0], [1], [0, 0, 1, 1], [], []>, precision = #tpu.contract_precision<fp32>} : vector<4x32xf32>, vector<32x64xf32>, vector<4x64xf32> -> vector<4x64xf32>
    %57 = arith.addf %56, %2 : vector<4x64xf32>
    %58 = arith.negf %57 : vector<4x64xf32>
    %59 = math.exp %58 : vector<4x64xf32>
    %cst_27 = arith.constant 1.000000e+00 : f32
    %60 = vector.broadcast %cst_27 : f32 to vector<4x64xf32>
    %61 = arith.addf %60, %59 : vector<4x64xf32>
    %62 = arith.divf %60, %61 : vector<4x64xf32>
    %63 = vector.extract_strided_slice %62 {offsets = [0, 0], sizes = [4, 32], strides = [1, 1]} : vector<4x64xf32> to vector<4x32xf32>
    %64 = vector.extract_strided_slice %62 {offsets = [0, 32], sizes = [4, 32], strides = [1, 1]} : vector<4x64xf32> to vector<4x32xf32>
    %65 = arith.mulf %64, %55 : vector<4x32xf32>
    %cst_28 = arith.constant dense<0.000000e+00> : vector<4x32xf32>
    %66 = tpu.matmul %65, %1, %cst_28 {dimension_numbers = #tpu.dot_dimension_numbers<[1], [0], [0], [1], [0, 0, 1, 1], [], []>, precision = #tpu.contract_precision<fp32>} : vector<4x32xf32>, vector<32x32xf32>, vector<4x32xf32> -> vector<4x32xf32>
    %67 = arith.addf %66, %3 : vector<4x32xf32>
    %68 = math.tanh %67 : vector<4x32xf32>
    %cst_29 = arith.constant 1.000000e+00 : f32
    %69 = vector.broadcast %cst_29 : f32 to vector<4x32xf32>
    %70 = arith.subf %69, %63 : vector<4x32xf32>
    %71 = arith.mulf %70, %55 : vector<4x32xf32>
    %72 = arith.mulf %63, %68 : vector<4x32xf32>
    %73 = arith.addf %71, %72 : vector<4x32xf32>
    %c5 = arith.constant 5 : index
    %c0_30 = arith.constant 0 : index
    %c0_31 = arith.constant 0 : index
    %74 = vector.load %arg5[%c5, %c0_30, %c0_31] : memref<8x4x32xf32, #tpu.memory_space<vmem>>, vector<1x4x32xf32>
    %75 = vector.shape_cast %74 : vector<1x4x32xf32> to vector<4x32xf32>
    %76 = vector.shape_cast %73 : vector<4x32xf32> to vector<1x4x32xf32>
    tpu.vector_store %arg5[%c5, %c0_30, %c0_31], %76 {strides = array<i32>} : memref<8x4x32xf32, #tpu.memory_space<vmem>>, vector<1x4x32xf32>,
    %c3 = arith.constant 3 : index
    %c0_32 = arith.constant 0 : index
    %c0_33 = arith.constant 0 : index
    %77 = vector.load %arg0[%c3, %c0_32, %c0_33] : memref<8x4x32xf32, #tpu.memory_space<vmem>>, vector<1x4x32xf32>
    %78 = vector.shape_cast %77 : vector<1x4x32xf32> to vector<4x32xf32>
    %79 = arith.mulf %78, %73 : vector<4x32xf32>
    %cst_34 = arith.constant dense<0.000000e+00> : vector<4x64xf32>
    %80 = tpu.matmul %79, %0, %cst_34 {dimension_numbers = #tpu.dot_dimension_numbers<[1], [0], [0], [1], [0, 0, 1, 1], [], []>, precision = #tpu.contract_precision<fp32>} : vector<4x32xf32>, vector<32x64xf32>, vector<4x64xf32> -> vector<4x64xf32>
    %81 = arith.addf %80, %2 : vector<4x64xf32>
    %82 = arith.negf %81 : vector<4x64xf32>
    %83 = math.exp %82 : vector<4x64xf32>
    %cst_35 = arith.constant 1.000000e+00 : f32
    %84 = vector.broadcast %cst_35 : f32 to vector<4x64xf32>
    %85 = arith.addf %84, %83 : vector<4x64xf32>
    %86 = arith.divf %84, %85 : vector<4x64xf32>
    %87 = vector.extract_strided_slice %86 {offsets = [0, 0], sizes = [4, 32], strides = [1, 1]} : vector<4x64xf32> to vector<4x32xf32>
    %88 = vector.extract_strided_slice %86 {offsets = [0, 32], sizes = [4, 32], strides = [1, 1]} : vector<4x64xf32> to vector<4x32xf32>
    %89 = arith.mulf %88, %79 : vector<4x32xf32>
    %cst_36 = arith.constant dense<0.000000e+00> : vector<4x32xf32>
    %90 = tpu.matmul %89, %1, %cst_36 {dimension_numbers = #tpu.dot_dimension_numbers<[1], [0], [0], [1], [0, 0, 1, 1], [], []>, precision = #tpu.contract_precision<fp32>} : vector<4x32xf32>, vector<32x32xf32>, vector<4x32xf32> -> vector<4x32xf32>
    %91 = arith.addf %90, %3 : vector<4x32xf32>
    %92 = math.tanh %91 : vector<4x32xf32>
    %cst_37 = arith.constant 1.000000e+00 : f32
    %93 = vector.broadcast %cst_37 : f32 to vector<4x32xf32>
    %94 = arith.subf %93, %87 : vector<4x32xf32>
    %95 = arith.mulf %94, %79 : vector<4x32xf32>
    %96 = arith.mulf %87, %92 : vector<4x32xf32>
    %97 = arith.addf %95, %96 : vector<4x32xf32>
    %c4 = arith.constant 4 : index
    %c0_38 = arith.constant 0 : index
    %c0_39 = arith.constant 0 : index
    %98 = vector.load %arg5[%c4, %c0_38, %c0_39] : memref<8x4x32xf32, #tpu.memory_space<vmem>>, vector<1x4x32xf32>
    %99 = vector.shape_cast %98 : vector<1x4x32xf32> to vector<4x32xf32>
    %100 = vector.shape_cast %97 : vector<4x32xf32> to vector<1x4x32xf32>
    tpu.vector_store %arg5[%c4, %c0_38, %c0_39], %100 {strides = array<i32>} : memref<8x4x32xf32, #tpu.memory_space<vmem>>, vector<1x4x32xf32>,
    %c4_40 = arith.constant 4 : index
    %c0_41 = arith.constant 0 : index
    %c0_42 = arith.constant 0 : index
    %101 = vector.load %arg0[%c4_40, %c0_41, %c0_42] : memref<8x4x32xf32, #tpu.memory_space<vmem>>, vector<1x4x32xf32>
    %102 = vector.shape_cast %101 : vector<1x4x32xf32> to vector<4x32xf32>
    %103 = arith.mulf %102, %97 : vector<4x32xf32>
    %cst_43 = arith.constant dense<0.000000e+00> : vector<4x64xf32>
    %104 = tpu.matmul %103, %0, %cst_43 {dimension_numbers = #tpu.dot_dimension_numbers<[1], [0], [0], [1], [0, 0, 1, 1], [], []>, precision = #tpu.contract_precision<fp32>} : vector<4x32xf32>, vector<32x64xf32>, vector<4x64xf32> -> vector<4x64xf32>
    %105 = arith.addf %104, %2 : vector<4x64xf32>
    %106 = arith.negf %105 : vector<4x64xf32>
    %107 = math.exp %106 : vector<4x64xf32>
    %cst_44 = arith.constant 1.000000e+00 : f32
    %108 = vector.broadcast %cst_44 : f32 to vector<4x64xf32>
    %109 = arith.addf %108, %107 : vector<4x64xf32>
    %110 = arith.divf %108, %109 : vector<4x64xf32>
    %111 = vector.extract_strided_slice %110 {offsets = [0, 0], sizes = [4, 32], strides = [1, 1]} : vector<4x64xf32> to vector<4x32xf32>
    %112 = vector.extract_strided_slice %110 {offsets = [0, 32], sizes = [4, 32], strides = [1, 1]} : vector<4x64xf32> to vector<4x32xf32>
    %113 = arith.mulf %112, %103 : vector<4x32xf32>
    %cst_45 = arith.constant dense<0.000000e+00> : vector<4x32xf32>
    %114 = tpu.matmul %113, %1, %cst_45 {dimension_numbers = #tpu.dot_dimension_numbers<[1], [0], [0], [1], [0, 0, 1, 1], [], []>, precision = #tpu.contract_precision<fp32>} : vector<4x32xf32>, vector<32x32xf32>, vector<4x32xf32> -> vector<4x32xf32>
    %115 = arith.addf %114, %3 : vector<4x32xf32>
    %116 = math.tanh %115 : vector<4x32xf32>
    %cst_46 = arith.constant 1.000000e+00 : f32
    %117 = vector.broadcast %cst_46 : f32 to vector<4x32xf32>
    %118 = arith.subf %117, %111 : vector<4x32xf32>
    %119 = arith.mulf %118, %103 : vector<4x32xf32>
    %120 = arith.mulf %111, %116 : vector<4x32xf32>
    %121 = arith.addf %119, %120 : vector<4x32xf32>
    %c3_47 = arith.constant 3 : index
    %c0_48 = arith.constant 0 : index
    %c0_49 = arith.constant 0 : index
    %122 = vector.load %arg5[%c3_47, %c0_48, %c0_49] : memref<8x4x32xf32, #tpu.memory_space<vmem>>, vector<1x4x32xf32>
    %123 = vector.shape_cast %122 : vector<1x4x32xf32> to vector<4x32xf32>
    %124 = vector.shape_cast %121 : vector<4x32xf32> to vector<1x4x32xf32>
    tpu.vector_store %arg5[%c3_47, %c0_48, %c0_49], %124 {strides = array<i32>} : memref<8x4x32xf32, #tpu.memory_space<vmem>>, vector<1x4x32xf32>,
    %c5_50 = arith.constant 5 : index
    %c0_51 = arith.constant 0 : index
    %c0_52 = arith.constant 0 : index
    %125 = vector.load %arg0[%c5_50, %c0_51, %c0_52] : memref<8x4x32xf32, #tpu.memory_space<vmem>>, vector<1x4x32xf32>
    %126 = vector.shape_cast %125 : vector<1x4x32xf32> to vector<4x32xf32>
    %127 = arith.mulf %126, %121 : vector<4x32xf32>
    %cst_53 = arith.constant dense<0.000000e+00> : vector<4x64xf32>
    %128 = tpu.matmul %127, %0, %cst_53 {dimension_numbers = #tpu.dot_dimension_numbers<[1], [0], [0], [1], [0, 0, 1, 1], [], []>, precision = #tpu.contract_precision<fp32>} : vector<4x32xf32>, vector<32x64xf32>, vector<4x64xf32> -> vector<4x64xf32>
    %129 = arith.addf %128, %2 : vector<4x64xf32>
    %130 = arith.negf %129 : vector<4x64xf32>
    %131 = math.exp %130 : vector<4x64xf32>
    %cst_54 = arith.constant 1.000000e+00 : f32
    %132 = vector.broadcast %cst_54 : f32 to vector<4x64xf32>
    %133 = arith.addf %132, %131 : vector<4x64xf32>
    %134 = arith.divf %132, %133 : vector<4x64xf32>
    %135 = vector.extract_strided_slice %134 {offsets = [0, 0], sizes = [4, 32], strides = [1, 1]} : vector<4x64xf32> to vector<4x32xf32>
    %136 = vector.extract_strided_slice %134 {offsets = [0, 32], sizes = [4, 32], strides = [1, 1]} : vector<4x64xf32> to vector<4x32xf32>
    %137 = arith.mulf %136, %127 : vector<4x32xf32>
    %cst_55 = arith.constant dense<0.000000e+00> : vector<4x32xf32>
    %138 = tpu.matmul %137, %1, %cst_55 {dimension_numbers = #tpu.dot_dimension_numbers<[1], [0], [0], [1], [0, 0, 1, 1], [], []>, precision = #tpu.contract_precision<fp32>} : vector<4x32xf32>, vector<32x32xf32>, vector<4x32xf32> -> vector<4x32xf32>
    %139 = arith.addf %138, %3 : vector<4x32xf32>
    %140 = math.tanh %139 : vector<4x32xf32>
    %cst_56 = arith.constant 1.000000e+00 : f32
    %141 = vector.broadcast %cst_56 : f32 to vector<4x32xf32>
    %142 = arith.subf %141, %135 : vector<4x32xf32>
    %143 = arith.mulf %142, %127 : vector<4x32xf32>
    %144 = arith.mulf %135, %140 : vector<4x32xf32>
    %145 = arith.addf %143, %144 : vector<4x32xf32>
    %c2_57 = arith.constant 2 : index
    %c0_58 = arith.constant 0 : index
    %c0_59 = arith.constant 0 : index
    %146 = vector.load %arg5[%c2_57, %c0_58, %c0_59] : memref<8x4x32xf32, #tpu.memory_space<vmem>>, vector<1x4x32xf32>
    %147 = vector.shape_cast %146 : vector<1x4x32xf32> to vector<4x32xf32>
    %148 = vector.shape_cast %145 : vector<4x32xf32> to vector<1x4x32xf32>
    tpu.vector_store %arg5[%c2_57, %c0_58, %c0_59], %148 {strides = array<i32>} : memref<8x4x32xf32, #tpu.memory_space<vmem>>, vector<1x4x32xf32>,
    %c6_60 = arith.constant 6 : index
    %c0_61 = arith.constant 0 : index
    %c0_62 = arith.constant 0 : index
    %149 = vector.load %arg0[%c6_60, %c0_61, %c0_62] : memref<8x4x32xf32, #tpu.memory_space<vmem>>, vector<1x4x32xf32>
    %150 = vector.shape_cast %149 : vector<1x4x32xf32> to vector<4x32xf32>
    %151 = arith.mulf %150, %145 : vector<4x32xf32>
    %cst_63 = arith.constant dense<0.000000e+00> : vector<4x64xf32>
    %152 = tpu.matmul %151, %0, %cst_63 {dimension_numbers = #tpu.dot_dimension_numbers<[1], [0], [0], [1], [0, 0, 1, 1], [], []>, precision = #tpu.contract_precision<fp32>} : vector<4x32xf32>, vector<32x64xf32>, vector<4x64xf32> -> vector<4x64xf32>
    %153 = arith.addf %152, %2 : vector<4x64xf32>
    %154 = arith.negf %153 : vector<4x64xf32>
    %155 = math.exp %154 : vector<4x64xf32>
    %cst_64 = arith.constant 1.000000e+00 : f32
    %156 = vector.broadcast %cst_64 : f32 to vector<4x64xf32>
    %157 = arith.addf %156, %155 : vector<4x64xf32>
    %158 = arith.divf %156, %157 : vector<4x64xf32>
    %159 = vector.extract_strided_slice %158 {offsets = [0, 0], sizes = [4, 32], strides = [1, 1]} : vector<4x64xf32> to vector<4x32xf32>
    %160 = vector.extract_strided_slice %158 {offsets = [0, 32], sizes = [4, 32], strides = [1, 1]} : vector<4x64xf32> to vector<4x32xf32>
    %161 = arith.mulf %160, %151 : vector<4x32xf32>
    %cst_65 = arith.constant dense<0.000000e+00> : vector<4x32xf32>
    %162 = tpu.matmul %161, %1, %cst_65 {dimension_numbers = #tpu.dot_dimension_numbers<[1], [0], [0], [1], [0, 0, 1, 1], [], []>, precision = #tpu.contract_precision<fp32>} : vector<4x32xf32>, vector<32x32xf32>, vector<4x32xf32> -> vector<4x32xf32>
    %163 = arith.addf %162, %3 : vector<4x32xf32>
    %164 = math.tanh %163 : vector<4x32xf32>
    %cst_66 = arith.constant 1.000000e+00 : f32
    %165 = vector.broadcast %cst_66 : f32 to vector<4x32xf32>
    %166 = arith.subf %165, %159 : vector<4x32xf32>
    %167 = arith.mulf %166, %151 : vector<4x32xf32>
    %168 = arith.mulf %159, %164 : vector<4x32xf32>
    %169 = arith.addf %167, %168 : vector<4x32xf32>
    %c1_67 = arith.constant 1 : index
    %c0_68 = arith.constant 0 : index
    %c0_69 = arith.constant 0 : index
    %170 = vector.load %arg5[%c1_67, %c0_68, %c0_69] : memref<8x4x32xf32, #tpu.memory_space<vmem>>, vector<1x4x32xf32>
    %171 = vector.shape_cast %170 : vector<1x4x32xf32> to vector<4x32xf32>
    %172 = vector.shape_cast %169 : vector<4x32xf32> to vector<1x4x32xf32>
    tpu.vector_store %arg5[%c1_67, %c0_68, %c0_69], %172 {strides = array<i32>} : memref<8x4x32xf32, #tpu.memory_space<vmem>>, vector<1x4x32xf32>,
    %c7_70 = arith.constant 7 : index
    %c0_71 = arith.constant 0 : index
    %c0_72 = arith.constant 0 : index
    %173 = vector.load %arg0[%c7_70, %c0_71, %c0_72] : memref<8x4x32xf32, #tpu.memory_space<vmem>>, vector<1x4x32xf32>
    %174 = vector.shape_cast %173 : vector<1x4x32xf32> to vector<4x32xf32>
    %175 = arith.mulf %174, %169 : vector<4x32xf32>
    %cst_73 = arith.constant dense<0.000000e+00> : vector<4x64xf32>
    %176 = tpu.matmul %175, %0, %cst_73 {dimension_numbers = #tpu.dot_dimension_numbers<[1], [0], [0], [1], [0, 0, 1, 1], [], []>, precision = #tpu.contract_precision<fp32>} : vector<4x32xf32>, vector<32x64xf32>, vector<4x64xf32> -> vector<4x64xf32>
    %177 = arith.addf %176, %2 : vector<4x64xf32>
    %178 = arith.negf %177 : vector<4x64xf32>
    %179 = math.exp %178 : vector<4x64xf32>
    %cst_74 = arith.constant 1.000000e+00 : f32
    %180 = vector.broadcast %cst_74 : f32 to vector<4x64xf32>
    %181 = arith.addf %180, %179 : vector<4x64xf32>
    %182 = arith.divf %180, %181 : vector<4x64xf32>
    %183 = vector.extract_strided_slice %182 {offsets = [0, 0], sizes = [4, 32], strides = [1, 1]} : vector<4x64xf32> to vector<4x32xf32>
    %184 = vector.extract_strided_slice %182 {offsets = [0, 32], sizes = [4, 32], strides = [1, 1]} : vector<4x64xf32> to vector<4x32xf32>
    %185 = arith.mulf %184, %175 : vector<4x32xf32>
    %cst_75 = arith.constant dense<0.000000e+00> : vector<4x32xf32>
    %186 = tpu.matmul %185, %1, %cst_75 {dimension_numbers = #tpu.dot_dimension_numbers<[1], [0], [0], [1], [0, 0, 1, 1], [], []>, precision = #tpu.contract_precision<fp32>} : vector<4x32xf32>, vector<32x32xf32>, vector<4x32xf32> -> vector<4x32xf32>
    %187 = arith.addf %186, %3 : vector<4x32xf32>
    %188 = math.tanh %187 : vector<4x32xf32>
    %cst_76 = arith.constant 1.000000e+00 : f32
    %189 = vector.broadcast %cst_76 : f32 to vector<4x32xf32>
    %190 = arith.subf %189, %183 : vector<4x32xf32>
    %191 = arith.mulf %190, %175 : vector<4x32xf32>
    %192 = arith.mulf %183, %188 : vector<4x32xf32>
    %193 = arith.addf %191, %192 : vector<4x32xf32>
    %c0_77 = arith.constant 0 : index
    %c0_78 = arith.constant 0 : index
    %c0_79 = arith.constant 0 : index
    %194 = vector.load %arg5[%c0_77, %c0_78, %c0_79] : memref<8x4x32xf32, #tpu.memory_space<vmem>>, vector<1x4x32xf32>
    %195 = vector.shape_cast %194 : vector<1x4x32xf32> to vector<4x32xf32>
    %196 = vector.shape_cast %193 : vector<4x32xf32> to vector<1x4x32xf32>
    tpu.vector_store %arg5[%c0_77, %c0_78, %c0_79], %196 {strides = array<i32>} : memref<8x4x32xf32, #tpu.memory_space<vmem>>, vector<1x4x32xf32>,
    return
  }
}

</mosaic_0001>

<bundles_post_ra>
// kernel: grud_decoder_forward.1
= control target key start
LH: loop header
LB: loop body
LE: loop exit
PB: predicated region body
PF: predicated region fallthrough
CT: control target
= control target key end

     0   :  { %vm32_vm0 = vcmask 261120   ;;  %s3397_s9 = smov 96   ;;  %vm440_vm5 = vcmask 257024   ;;  %s4101_s3 = inlined_call_operand.vmem [shape: f32[32,64], index: 3, kind: input, shape index: {}]   ;;  %s4102_s0 = inlined_call_operand.vmem [shape: f32[8,4,32], index: 0, kind: input, shape index: {}]   ;;  %s4103_s1 = inlined_call_operand.vmem [shape: f32[4,64], index: 1, kind: input, shape index: {}]   ;;  %s4104_s4 = inlined_call_operand.vmem [shape: f32[32,32], index: 4, kind: input, shape index: {}]   ;;  %s4105_s2 = inlined_call_operand.vmem [shape: f32[4,32], index: 2, kind: input, shape index: {}]   ;;  %s4106_s5 = inlined_call_operand.vmem [shape: f32[8,4,32], index: 5, kind: output, shape index: {}]  }
   0x1   :  { %v23_v0 = vld [vmem:[%s4101_s3 + $0x18] sm:$0xff]  ;;  %v22_v1 = vld [vmem:[%s4101_s3 + $0x10] sm:$0xff]  ;;  %v21_v2 = vld [vmem:[%s4101_s3 + $0x8] sm:$0xff] }
   0x2   :  { %v3437_v3 = vand.u32 4294901760, %v23_v0  ;;  %v3439_v4 = vand.u32 4294901760, %v22_v1  ;;  %v3441_v5 = vand.u32 4294901760, %v21_v2  ;;  %v20_v6 = vld [vmem:[%s4101_s3] sm:$0xff]  ;;  %s3396_s3 = smov 32   ;;  %v27_v45 = vld [vmem:[%s4104_s4 + $0x18] sm:$0xff] }
   0x3   :  { %v30_v7 = vld [vmem:[%s4102_s0] sm:$0xf]  ;;  %v3449_v8 = vand.u32 4294901760, %v20_v6  ;;  %v26_v46 = vld [vmem:[%s4104_s4 + $0x10] sm:$0xff]  ;;  %v3533_v47 = vand.u32 4294901760, %v27_v45 }
   0x4   :  { %v3451_v9 = vmul.f32 0.0, %v30_v7  ;;  %v3454_v10 = vsub.f32 %v23_v0, %v3437_v3  ;;  %49 = vmatpush.msra.mxu0 %v3437_v3  ;;  %v3458_v11 = vsub.f32 %v22_v1, %v3439_v4  ;;  %149 = vmatpush.msra.mxu3 %v3437_v3  ;;  %v3462_v12 = vsub.f32 %v21_v2, %v3441_v5  ;;  %v3524_v32 = vld [vmem:[%s4103_s1] sm:$0xf] }
   0x5   :  { %v3465_v13 = vsub.f32 %v20_v6, %v3449_v8  ;;  %v3535_v48 = vand.u32 4294901760, %v26_v46  ;;  %v3538_v50 = vsub.f32 %v27_v45, %v3533_v47  ;;  %v3651_v45 = vld [vmem:[%s4105_s2] sm:$0xf] }
   0x6   :  { %v34_v14 = vsel %vm32_vm0, %v3451_v9, 0  ;;  %240 = vrot.lane.b32.xlu0 %v3451_v9, %s3396_s3  ;;  %120 = vmatpush.msra.mxu2 %v3454_v10  ;;  %v3474_v15 = vand.u32 4294901760, %v3454_v10  ;;  %v3477_v16 = vand.u32 4294901760, %v3458_v11  ;;  %v3480_v18 = vand.u32 4294901760, %v3462_v12 }
   0x7   :  { %51 = vmatpush.msra.mxu0 %v3439_v4  ;;  %v56_v17 = vand.u32 4294901760, %v34_v14  ;;  %151 = vmatpush.msra.mxu3 %v3439_v4  ;;  %v3484_v19 = vand.u32 4294901760, %v3465_v13  ;;  %v3541_v51 = vsub.f32 %v26_v46, %v3535_v48  ;;  %v3546_v52 = vand.u32 4294901760, %v3538_v50 }
   0x8   :  { %123 = vmatpush.msra.mxu2 %v3458_v11  ;;  %v80_v20 = vsub.f32 %v3454_v10, %v3474_v15  ;;  %v86_v21 = vsub.f32 %v3458_v11, %v3477_v16  ;;  %v92_v23 = vsub.f32 %v3462_v12, %v3480_v18 }
   0x9   :  { %53 = vmatpush.msra.mxu0 %v3441_v5  ;;  %v57_v22 = vsub.f32 %v34_v14, %v56_v17  ;;  %153 = vmatpush.msra.mxu3 %v3441_v5  ;;  %v98_v27 = vsub.f32 %v3465_v13, %v3484_v19  ;;  %v3549_v53 = vand.u32 4294901760, %v3541_v51  ;;  %v293_v54 = vsub.f32 %v3538_v50, %v3546_v52 }
   0xa   :  { %v3495_v24 = vand.u32 4294901760, %v80_v20  ;;  %126 = vmatpush.msra.mxu2 %v3462_v12  ;;  %v3498_v25 = vand.u32 4294901760, %v86_v21  ;;  %v3507_v28 = vand.u32 4294901760, %v92_v23  ;;  %v25_v21 = vld [vmem:[%s4104_s4 + $0x8] sm:$0xff]  ;;  %v24_v23 = vld [vmem:[%s4104_s4] sm:$0xff] }
   0xb   :  { %55 = vmatpush.msra.mxu0 %v3449_v8  ;;  %v58_v26 = vand.u32 4294901760, %v57_v22  ;;  %155 = vmatpush.msra.mxu3 %v3449_v8  ;;  %v3510_v31 = vand.u32 4294901760, %v98_v27  ;;  %v299_v55 = vsub.f32 %v3541_v51, %v3549_v53  ;;  %v3559_v56 = vand.u32 4294901760, %v293_v54 }
   0xc   :  { %82 = vmatpush.msra.mxu1 %v3495_v24  ;;  %129 = vmatpush.msra.mxu2 %v3465_v13  ;;  %v3580_v27 = vand.u32 4294901760, %v24_v23 }
   0xd   :  { %178 = vmatpush.msrb.mxu0 %v3474_v15  ;;  %v59_v29 = vsub.f32 %v57_v22, %v58_v26  ;;  %132 = vmatmul.f32.vlgmr.msra.gmra.mxu2 %v57_v22  ;;  %v3561_v57 = vand.u32 4294901760, %v299_v55  ;;  %v3572_v22 = vand.u32 4294901760, %v25_v21 }
   0xe   :  { %159 = vmatmul.f32.vlgmr.msra.gmra.mxu3 %v58_v26  ;;  %88 = vmatpush.msra.mxu1 %v3498_v25 }
   0xf   :  { %v60_v30 = vand.u32 4294901760, %v59_v29  ;;  %182 = vmatpush.msrb.mxu0 %v3477_v16  ;;  %262 = vmatpush.msrb.mxu2 %v3533_v47  ;;  %v3578_v26 = vsub.f32 %v25_v21, %v3572_v22 }
  0x10   :  { %94 = vmatpush.msra.mxu1 %v3507_v28  ;;  %295 = vmatpush.msrb.mxu3 %v3559_v56 }
  0x11   :  { %61 = vmatmul.f32.vlgmr.msra.gmra.mxu0 %v60_v30  ;;  %264 = vmatpush.msrb.mxu2 %v3535_v48  ;;  %v3585_v29 = vand.u32 4294901760, %v3578_v26  ;;  %v3588_v30 = vsub.f32 %v24_v23, %v3580_v27 }
  0x12   :  { %186 = vmatpush.msrb.mxu0 %v3480_v18  ;;  %100 = vmatpush.msra.mxu1 %v3510_v31 }
  0x13   :  { %102 = vmatmul.f32.vlgmr.msra.gmra.mxu1 %v56_v17  ;;  %301 = vmatpush.msrb.mxu3 %v3561_v57 }
  0x14   :  { %190 = vmatpush.msrb.mxu0 %v3484_v19  ;;  %209 = vmatpush.msrb.mxu1 %v3437_v3 }
  0x15   :  { %266 = vmatpush.msrb.mxu2 %v3572_v22 }
  0x16   :  { %211 = vmatpush.msrb.mxu1 %v3439_v4  ;;  %333 = vmatpush.msra.mxu0 %v3538_v50 }
  0x17   :  { %268 = vmatpush.msrb.mxu2 %v3580_v27 }
  0x18   :  { %213 = vmatpush.msrb.mxu1 %v3441_v5  ;;  %336 = vmatpush.msra.mxu0 %v3541_v51 }
  0x19   :  { %192 = vmatmul.f32.vlgmr.msrb.gmra.mxu0 %v56_v17  ;;  %391 = vmatpush.msra.mxu2 %v3546_v52 }
  0x1a   :  { %215 = vmatpush.msrb.mxu1 %v3449_v8  ;;  %339 = vmatpush.msra.mxu0 %v3578_v26 }
  0x1b   :  { %217 = vmatmul.f32.vlgmr.msrb.gmra.mxu1 %v56_v17  ;;  %395 = vmatpush.msra.mxu2 %v3549_v53 }
  0x1c   :  { %362 = vmatpush.msra.mxu1 %v3533_v47  ;;  %342 = vmatpush.msra.mxu0 %v3588_v30 }
  0x1d   :  { %399 = vmatpush.msra.mxu2 %v3585_v29 }
  0x1e   :  { %364 = vmatpush.msra.mxu1 %v3535_v48  ;;  %461 = vmatpush.msrb.mxu0 %v3437_v3 }
  0x20   :  { %366 = vmatpush.msra.mxu1 %v3572_v22  ;;  %463 = vmatpush.msrb.mxu0 %v3439_v4 }
  0x22   :  { %368 = vmatpush.msra.mxu1 %v3580_v27  ;;  %465 = vmatpush.msrb.mxu0 %v3441_v5 }
  0x24   :  { %494 = vmatpush.msrb.mxu1 %v3495_v24  ;;  %467 = vmatpush.msrb.mxu0 %v3449_v8 }
  0x26   :  { %500 = vmatpush.msrb.mxu1 %v3498_v25 }
  0x28   :  { %506 = vmatpush.msrb.mxu1 %v3507_v28 }
  0x2a   :  { %512 = vmatpush.msrb.mxu1 %v3510_v31 }
  0x78   :  { %v241_v6 = vpop.permute.xlu0 %240 }
  0x8e   :  { %v62_v33 = vpop.f32.mrf.mxu0 }
  0x8f   :  { %v63_v34 = vadd.f32 %v62_v33, %v3524_v32  ;;  %v305_v33 = vsub.f32 %v3578_v26, %v3585_v29 }
  0x90   :  { %v103_v35 = vpop.f32.mrf.mxu1  ;;  %v133_v36 = vpop.f32.mrf.mxu2 }
  0x91   :  { %v104_v37 = vadd.f32 %v103_v35, %v63_v34  ;;  %v160_v38 = vpop.f32.mrf.mxu3  ;;  %v3597_v34 = vand.u32 4294901760, %v3588_v30  ;;  %v3603_v35 = vand.u32 4294901760, %v305_v33 }
  0x93   :  { %v134_v39 = vadd.f32 %v133_v36, %v104_v37  ;;  %v311_v36 = vsub.f32 %v3588_v30, %v3597_v34  ;;  %307 = vmatpush.msrb.mxu3 %v3603_v35  ;;  %403 = vmatpush.msra.mxu2 %v3597_v34 }
  0x95   :  { %v161_v40 = vadd.f32 %v160_v38, %v134_v39  ;;  %v3611_v37 = vand.u32 4294901760, %v311_v36 }
  0x96   :  { %v193_v41 = vpop.f32.mrf.mxu0 }
  0x97   :  { %v194_v42 = vadd.f32 %v193_v41, %v161_v40  ;;  %313 = vmatpush.msrb.mxu3 %v3611_v37 }
  0x98   :  { %v218_v43 = vpop.f32.mrf.mxu1 }
  0x99   :  { %v219_v44 = vadd.f32 %v218_v43, %v194_v42  ;;  %422 = vmatpush.msra.mxu3 %v3533_v47 }
  0x9b   :  { %v3322_v49 = vmul.f32 -1.442695, %v219_v44  ;;  %424 = vmatpush.msra.mxu3 %v3535_v48 }
  0x9d   :  { %3346 = vpow2.f32 %v3322_v49  ;;  %426 = vmatpush.msra.mxu3 %v3572_v22 }
  0x9f   :  { %428 = vmatpush.msra.mxu3 %v3580_v27 }
  0xa3   :  { %v3347_v58 = vpop.eup %3346 }
  0xa4   :  { %v224_v59 = vadd.f32 1.0, %v3347_v58 }
  0xa6   :  { %3348 = vrcp.f32 %v224_v59  ;;  %v236_v63 = vand.u32 2147483648, %v224_v59  ;;  %v234_v1 = vand.u32 2147483647, %v224_v59  ;;  %vm230_vm2 = vweird.f32 %v224_v59 }
  0xa8   :  { %v237_v7 = vor.u32 1.1754944e-38, %v236_v63  ;;  %vm235_vm4 = vcmp.eq.f32.partialorder %v234_v1, 8.507059e+37 }
  0xac   :  { %v3349_v60 = vpop.eup %3348 }
  0xad   :  { %v226_v61 = vmul.f32 %v3349_v60, %v224_v59  ;;  %vm231_vm1 = vweird.f32 %v3349_v60 }
  0xae   :  { %vm232_vm3 = vmor %vm230_vm2, %vm231_vm1 }
  0xaf   :  { %v227_v62 = vsub.f32 1.0, %v226_v61 }
  0xb1   :  { %v228_v0 = vmul.f32 %v3349_v60, %v227_v62 }
  0xb3   :  { %v229_v2 = vadd.f32 %v3349_v60, %v228_v0 }
  0xb5   :  { %v233_v14 = vsel %vm232_vm3, %v3349_v60, %v229_v2 }
  0xb6   :  { %v3565_v17 = vsel %vm235_vm4, %v237_v7, %v233_v14 }
  0xb7   :  { %v243_v20 = vmul.f32 %v241_v6, %v3565_v17  ;;  %v435_v2 = vsub.f32 1.0, %v3565_v17 }
  0xb9   :  { %245 = vrot.lane.b32.xlu0 %v243_v20, %s3397_s9  ;;  %v436_v7 = vmul.f32 %v435_v2, %v3451_v9  ;;  %v3324_v20 = vld [vmem:[%s4102_s0 + $0x4] sm:$0xf] }
 0x12b   :  { %v246_v38 = vpop.permute.xlu0 %245 }
 0x12c   :  { %v247_v39 = vsel %vm32_vm0, %v246_v38, 0 }
 0x12d   :  { %v269_v40 = vand.u32 4294901760, %v247_v39 }
 0x12f   :  { %v270_v41 = vsub.f32 %v247_v39, %v269_v40  ;;  %315 = vmatmul.f32.vlgmr.msrb.gmra.mxu3 %v269_v40 }
 0x130   :  { %561 = vmatpush.msrb.mxu3 %v3437_v3 }
 0x131   :  { %v271_v42 = vand.u32 4294901760, %v270_v41  ;;  %345 = vmatmul.f32.vlgmr.msra.gmra.mxu0 %v270_v41 }
 0x132   :  { %563 = vmatpush.msrb.mxu3 %v3439_v4  ;;  %590 = vmatpush.msra.mxu0 %v3474_v15 }
 0x133   :  { %372 = vmatmul.f32.vlgmr.msra.gmra.mxu1 %v271_v42  ;;  %v272_v43 = vsub.f32 %v270_v41, %v271_v42 }
 0x134   :  { %565 = vmatpush.msrb.mxu3 %v3441_v5  ;;  %621 = vmatpush.msra.mxu1 %v3437_v3 }
 0x135   :  { %v273_v44 = vand.u32 4294901760, %v272_v43  ;;  %594 = vmatpush.msra.mxu0 %v3477_v16 }
 0x136   :  { %567 = vmatpush.msrb.mxu3 %v3449_v8  ;;  %623 = vmatpush.msra.mxu1 %v3439_v4 }
 0x137   :  { %274 = vmatmul.f32.vlgmr.msrb.gmra.mxu2 %v273_v44  ;;  %430 = vmatmul.f32.vlgmr.msra.gmra.mxu3 %v269_v40 }
 0x138   :  { %532 = vmatpush.msrb.mxu2 %v3454_v10  ;;  %625 = vmatpush.msra.mxu1 %v3441_v5 }
 0x139   :  { %598 = vmatpush.msra.mxu0 %v3480_v18  ;;  %707 = vmatpush.msra.mxu3 %v3559_v56 }
 0x13a   :  { %535 = vmatpush.msrb.mxu2 %v3458_v11  ;;  %627 = vmatpush.msra.mxu1 %v3449_v8 }
 0x13b   :  { %602 = vmatpush.msra.mxu0 %v3484_v19  ;;  %713 = vmatpush.msra.mxu3 %v3561_v57 }
 0x13c   :  { %538 = vmatpush.msrb.mxu2 %v3462_v12 }
 0x13d   :  { %719 = vmatpush.msra.mxu3 %v3603_v35 }
 0x13e   :  { %541 = vmatpush.msrb.mxu2 %v3465_v13 }
 0x13f   :  { %405 = vmatmul.f32.vlgmr.msra.gmra.mxu2 %v269_v40  ;;  %725 = vmatpush.msra.mxu3 %v3611_v37 }
 0x140   :  { %674 = vmatpush.msra.mxu2 %v3533_v47 }
 0x142   :  { %676 = vmatpush.msra.mxu2 %v3535_v48 }
 0x144   :  { %678 = vmatpush.msra.mxu2 %v3572_v22 }
 0x146   :  { %680 = vmatpush.msra.mxu2 %v3580_v27 }
 0x1ae   :  { %v346_v58 = vpop.f32.mrf.mxu0 }
 0x1b0   :  { %v373_v60 = vpop.f32.mrf.mxu1 }
 0x1b2   :  { %v316_v46 = vpop.f32.mrf.mxu3 }
 0x1ba   :  { %v275_v49 = vpop.f32.mrf.mxu2  ;;  %v431_v0 = vpop.f32.mrf.mxu3 }
 0x1bb   :  { %v276_v54 = vadd.f32 %v275_v49, %v3651_v45 }
 0x1bd   :  { %v317_v55 = vadd.f32 %v316_v46, %v276_v54 }
 0x1bf   :  { %v347_v59 = vadd.f32 %v346_v58, %v317_v55 }
 0x1c1   :  { %v374_v61 = vadd.f32 %v373_v60, %v347_v59 }
 0x1c2   :  { %v406_v62 = vpop.f32.mrf.mxu2 }
 0x1c3   :  { %v407_v63 = vadd.f32 %v406_v62, %v374_v61 }
 0x1c5   :  { %v432_v1 = vadd.f32 %v431_v0, %v407_v63 }
 0x1c7   :  { %3350 = vtanh.f32 %v432_v1 }
 0x1cd   :  { %v3351_v6 = vpop.eup %3350 }
 0x1ce   :  { %v437_v14 = vmul.f32 %v3351_v6, %v3565_v17 }
 0x1d0   :  { %v438_v21 = vadd.f32 %v437_v14, %v436_v7 }
 0x1d2   :  { %v3660_v23 = vmul.f32 %v3324_v20, %v438_v21  ;;  %3323 = vst.msk [vmem:[%s4106_s5 + $0x1c] sm:$0xf] %vm440_vm5, %v438_v21 }
 0x1d4   :  { %652 = vrot.lane.b32.xlu1 %v3660_v23, %s3396_s3  ;;  %v446_v9 = vsel %vm32_vm0, %v3660_v23, 0 }
 0x1d5   :  { %v468_v17 = vand.u32 4294901760, %v446_v9 }
 0x1d7   :  { %514 = vmatmul.f32.vlgmr.msrb.gmra.mxu1 %v468_v17  ;;  %v469_v33 = vsub.f32 %v446_v9, %v468_v17 }
 0x1d8   :  { %774 = vmatpush.msrb.mxu1 %v3533_v47 }
 0x1d9   :  { %544 = vmatmul.f32.vlgmr.msrb.gmra.mxu2 %v469_v33  ;;  %v470_v36 = vand.u32 4294901760, %v469_v33 }
 0x1da   :  { %776 = vmatpush.msrb.mxu1 %v3535_v48  ;;  %803 = vmatpush.msrb.mxu2 %v3546_v52 }
 0x1db   :  { %571 = vmatmul.f32.vlgmr.msrb.gmra.mxu3 %v470_v36  ;;  %v471_v38 = vsub.f32 %v469_v33, %v470_v36 }
 0x1dc   :  { %778 = vmatpush.msrb.mxu1 %v3572_v22  ;;  %834 = vmatpush.msrb.mxu3 %v3533_v47 }
 0x1dd   :  { %v472_v39 = vand.u32 4294901760, %v471_v38  ;;  %807 = vmatpush.msrb.mxu2 %v3549_v53 }
 0x1de   :  { %780 = vmatpush.msrb.mxu1 %v3580_v27  ;;  %836 = vmatpush.msrb.mxu3 %v3535_v48 }
 0x1df   :  { %473 = vmatmul.f32.vlgmr.msrb.gmra.mxu0 %v472_v39  ;;  %629 = vmatmul.f32.vlgmr.msra.gmra.mxu1 %v468_v17 }
 0x1e0   :  { %745 = vmatpush.msrb.mxu0 %v3538_v50  ;;  %838 = vmatpush.msrb.mxu3 %v3572_v22 }
 0x1e1   :  { %811 = vmatpush.msrb.mxu2 %v3585_v29  ;;  %905 = vmatpush.msra.mxu1 %v3495_v24 }
 0x1e2   :  { %748 = vmatpush.msrb.mxu0 %v3541_v51  ;;  %840 = vmatpush.msrb.mxu3 %v3580_v27 }
 0x1e3   :  { %815 = vmatpush.msrb.mxu2 %v3597_v34  ;;  %911 = vmatpush.msra.mxu1 %v3498_v25 }
 0x1e4   :  { %751 = vmatpush.msrb.mxu0 %v3578_v26 }
 0x1e5   :  { %917 = vmatpush.msra.mxu1 %v3507_v28 }
 0x1e6   :  { %754 = vmatpush.msrb.mxu0 %v3588_v30 }
 0x1e7   :  { %604 = vmatmul.f32.vlgmr.msra.gmra.mxu0 %v468_v17  ;;  %923 = vmatpush.msra.mxu1 %v3510_v31 }
 0x1e8   :  { %872 = vmatpush.msra.mxu0 %v3437_v3 }
 0x1ea   :  { %874 = vmatpush.msra.mxu0 %v3439_v4 }
 0x1ec   :  { %876 = vmatpush.msra.mxu0 %v3441_v5 }
 0x1ee   :  { %878 = vmatpush.msra.mxu0 %v3449_v8 }
 0x246   :  { %v653_v17 = vpop.permute.xlu1 %652 }
 0x254   :  { %v515_v40 = vpop.f32.mrf.mxu1 }
 0x25c   :  { %v474_v41 = vpop.f32.mrf.mxu0  ;;  %v545_v44 = vpop.f32.mrf.mxu2 }
 0x25d   :  { %v475_v42 = vadd.f32 %v474_v41, %v3524_v32  ;;  %v630_v59 = vpop.f32.mrf.mxu1 }
 0x25e   :  { %v572_v49 = vpop.f32.mrf.mxu3 }
 0x25f   :  { %v516_v43 = vadd.f32 %v515_v40, %v475_v42 }
 0x261   :  { %v546_v46 = vadd.f32 %v545_v44, %v516_v43 }
 0x263   :  { %v573_v54 = vadd.f32 %v572_v49, %v546_v46 }
 0x264   :  { %v605_v55 = vpop.f32.mrf.mxu0 }
 0x265   :  { %v606_v58 = vadd.f32 %v605_v55, %v573_v54 }
 0x267   :  { %v631_v60 = vadd.f32 %v630_v59, %v606_v58 }
 0x269   :  { %v3325_v61 = vmul.f32 -1.442695, %v631_v60 }
 0x26b   :  { %3352 = vpow2.f32 %v3325_v61 }
 0x271   :  { %v3353_v62 = vpop.eup %3352 }
 0x272   :  { %v636_v63 = vadd.f32 1.0, %v3353_v62 }
 0x274   :  { %3354 = vrcp.f32 %v636_v63  ;;  %v648_v6 = vand.u32 2147483648, %v636_v63  ;;  %v646_v14 = vand.u32 2147483647, %v636_v63  ;;  %vm642_vm7 = vweird.f32 %v636_v63 }
 0x276   :  { %v649_v21 = vor.u32 1.1754944e-38, %v648_v6  ;;  %vm647_vm9 = vcmp.eq.f32.partialorder %v646_v14, 8.507059e+37 }
 0x27a   :  { %v3355_v0 = vpop.eup %3354 }
 0x27b   :  { %v638_v1 = vmul.f32 %v3355_v0, %v636_v63  ;;  %vm643_vm6 = vweird.f32 %v3355_v0 }
 0x27c   :  { %vm644_vm8 = vmor %vm642_vm7, %vm643_vm6 }
 0x27d   :  { %v639_v2 = vsub.f32 1.0, %v638_v1 }
 0x27f   :  { %v640_v7 = vmul.f32 %v3355_v0, %v639_v2 }
 0x281   :  { %v641_v20 = vadd.f32 %v3355_v0, %v640_v7 }
 0x283   :  { %v645_v9 = vsel %vm644_vm8, %v3355_v0, %v641_v20  ;;  %v3327_v20 = vld [vmem:[%s4102_s0 + $0x8] sm:$0xf] }
 0x284   :  { %v650_v33 = vsel %vm647_vm9, %v649_v21, %v645_v9 }
 0x285   :  { %v655_v36 = vmul.f32 %v653_v17, %v650_v33  ;;  %v847_v2 = vsub.f32 1.0, %v650_v33 }
 0x287   :  { %657 = vrot.lane.b32.xlu1 %v655_v36, %s3397_s9  ;;  %v848_v7 = vmul.f32 %v847_v2, %v3660_v23 }
 0x2f9   :  { %v658_v38 = vpop.permute.xlu1 %657 }
 0x2fa   :  { %v659_v39 = vsel %vm32_vm0, %v658_v38, 0 }
 0x2fb   :  { %v681_v40 = vand.u32 4294901760, %v659_v39 }
 0x2fd   :  { %v682_v41 = vsub.f32 %v659_v39, %v681_v40  ;;  %727 = vmatmul.f32.vlgmr.msra.gmra.mxu3 %v681_v40 }
 0x2fe   :  { %972 = vmatpush.msra.mxu3 %v3437_v3 }
 0x2ff   :  { %v683_v42 = vand.u32 4294901760, %v682_v41  ;;  %757 = vmatmul.f32.vlgmr.msrb.gmra.mxu0 %v682_v41 }
 0x300   :  { %974 = vmatpush.msra.mxu3 %v3439_v4  ;;  %1001 = vmatpush.msrb.mxu0 %v3474_v15 }
 0x301   :  { %v684_v43 = vsub.f32 %v682_v41, %v683_v42  ;;  %784 = vmatmul.f32.vlgmr.msrb.gmra.mxu1 %v683_v42 }
 0x302   :  { %976 = vmatpush.msra.mxu3 %v3441_v5  ;;  %1032 = vmatpush.msrb.mxu1 %v3437_v3 }
 0x303   :  { %v685_v44 = vand.u32 4294901760, %v684_v43  ;;  %1005 = vmatpush.msrb.mxu0 %v3477_v16 }
 0x304   :  { %978 = vmatpush.msra.mxu3 %v3449_v8  ;;  %1034 = vmatpush.msrb.mxu1 %v3439_v4 }
 0x305   :  { %686 = vmatmul.f32.vlgmr.msra.gmra.mxu2 %v685_v44  ;;  %842 = vmatmul.f32.vlgmr.msrb.gmra.mxu3 %v681_v40 }
 0x306   :  { %943 = vmatpush.msra.mxu2 %v3454_v10  ;;  %1036 = vmatpush.msrb.mxu1 %v3441_v5 }
 0x307   :  { %1009 = vmatpush.msrb.mxu0 %v3480_v18  ;;  %1118 = vmatpush.msrb.mxu3 %v3559_v56 }
 0x308   :  { %946 = vmatpush.msra.mxu2 %v3458_v11  ;;  %1038 = vmatpush.msrb.mxu1 %v3449_v8 }
 0x309   :  { %1013 = vmatpush.msrb.mxu0 %v3484_v19  ;;  %1124 = vmatpush.msrb.mxu3 %v3561_v57 }
 0x30a   :  { %949 = vmatpush.msra.mxu2 %v3462_v12 }
 0x30b   :  { %1130 = vmatpush.msrb.mxu3 %v3603_v35 }
 0x30c   :  { %952 = vmatpush.msra.mxu2 %v3465_v13 }
 0x30d   :  { %817 = vmatmul.f32.vlgmr.msrb.gmra.mxu2 %v681_v40  ;;  %1136 = vmatpush.msrb.mxu3 %v3611_v37 }
 0x30e   :  { %1085 = vmatpush.msrb.mxu2 %v3533_v47 }
 0x310   :  { %1087 = vmatpush.msrb.mxu2 %v3535_v48 }
 0x312   :  { %1089 = vmatpush.msrb.mxu2 %v3572_v22 }
 0x314   :  { %1091 = vmatpush.msrb.mxu2 %v3580_v27 }
 0x37c   :  { %v758_v58 = vpop.f32.mrf.mxu0 }
 0x37e   :  { %v785_v60 = vpop.f32.mrf.mxu1 }
 0x380   :  { %v728_v46 = vpop.f32.mrf.mxu3 }
 0x388   :  { %v687_v49 = vpop.f32.mrf.mxu2  ;;  %v843_v0 = vpop.f32.mrf.mxu3 }
 0x389   :  { %v688_v54 = vadd.f32 %v687_v49, %v3651_v45 }
 0x38b   :  { %v729_v55 = vadd.f32 %v728_v46, %v688_v54 }
 0x38d   :  { %v759_v59 = vadd.f32 %v758_v58, %v729_v55 }
 0x38f   :  { %v786_v61 = vadd.f32 %v785_v60, %v759_v59 }
 0x390   :  { %v818_v62 = vpop.f32.mrf.mxu2 }
 0x391   :  { %v819_v63 = vadd.f32 %v818_v62, %v786_v61 }
 0x393   :  { %v844_v1 = vadd.f32 %v843_v0, %v819_v63 }
 0x395   :  { %3356 = vtanh.f32 %v844_v1 }
 0x39b   :  { %v3357_v6 = vpop.eup %3356 }
 0x39c   :  { %v849_v14 = vmul.f32 %v3357_v6, %v650_v33 }
 0x39e   :  { %v850_v21 = vadd.f32 %v849_v14, %v848_v7 }
 0x3a0   :  { %v3726_v9 = vmul.f32 %v3327_v20, %v850_v21  ;;  %3326 = vst.msk [vmem:[%s4106_s5 + $0x18] sm:$0xf] %vm440_vm5, %v850_v21 }
 0x3a2   :  { %1063 = vrot.lane.b32.xlu2 %v3726_v9, %s3396_s3  ;;  %v857_v17 = vsel %vm32_vm0, %v3726_v9, 0 }
 0x3a3   :  { %v879_v23 = vand.u32 4294901760, %v857_v17 }
 0x3a5   :  { %925 = vmatmul.f32.vlgmr.msra.gmra.mxu1 %v879_v23  ;;  %v880_v33 = vsub.f32 %v857_v17, %v879_v23 }
 0x3a6   :  { %1185 = vmatpush.msra.mxu1 %v3533_v47 }
 0x3a7   :  { %955 = vmatmul.f32.vlgmr.msra.gmra.mxu2 %v880_v33  ;;  %v881_v36 = vand.u32 4294901760, %v880_v33 }
 0x3a8   :  { %1187 = vmatpush.msra.mxu1 %v3535_v48  ;;  %1214 = vmatpush.msra.mxu2 %v3546_v52 }
 0x3a9   :  { %982 = vmatmul.f32.vlgmr.msra.gmra.mxu3 %v881_v36  ;;  %v882_v38 = vsub.f32 %v880_v33, %v881_v36 }
 0x3aa   :  { %1189 = vmatpush.msra.mxu1 %v3572_v22  ;;  %1245 = vmatpush.msra.mxu3 %v3533_v47 }
 0x3ab   :  { %v883_v39 = vand.u32 4294901760, %v882_v38  ;;  %1218 = vmatpush.msra.mxu2 %v3549_v53 }
 0x3ac   :  { %1191 = vmatpush.msra.mxu1 %v3580_v27  ;;  %1247 = vmatpush.msra.mxu3 %v3535_v48 }
 0x3ad   :  { %884 = vmatmul.f32.vlgmr.msra.gmra.mxu0 %v883_v39  ;;  %1040 = vmatmul.f32.vlgmr.msrb.gmra.mxu1 %v879_v23 }
 0x3ae   :  { %1156 = vmatpush.msra.mxu0 %v3538_v50  ;;  %1249 = vmatpush.msra.mxu3 %v3572_v22 }
 0x3af   :  { %1222 = vmatpush.msra.mxu2 %v3585_v29  ;;  %1316 = vmatpush.msrb.mxu1 %v3495_v24 }
 0x3b0   :  { %1159 = vmatpush.msra.mxu0 %v3541_v51  ;;  %1251 = vmatpush.msra.mxu3 %v3580_v27 }
 0x3b1   :  { %1226 = vmatpush.msra.mxu2 %v3597_v34  ;;  %1322 = vmatpush.msrb.mxu1 %v3498_v25 }
 0x3b2   :  { %1162 = vmatpush.msra.mxu0 %v3578_v26 }
 0x3b3   :  { %1328 = vmatpush.msrb.mxu1 %v3507_v28 }
 0x3b4   :  { %1165 = vmatpush.msra.mxu0 %v3588_v30 }
 0x3b5   :  { %1015 = vmatmul.f32.vlgmr.msrb.gmra.mxu0 %v879_v23  ;;  %1334 = vmatpush.msrb.mxu1 %v3510_v31 }
 0x3b6   :  { %1283 = vmatpush.msrb.mxu0 %v3437_v3 }
 0x3b8   :  { %1285 = vmatpush.msrb.mxu0 %v3439_v4 }
 0x3ba   :  { %1287 = vmatpush.msrb.mxu0 %v3441_v5 }
 0x3bc   :  { %1289 = vmatpush.msrb.mxu0 %v3449_v8 }
 0x3fc   :  { %v1064_v23 = vpop.permute.xlu2 %1063 }
 0x422   :  { %v926_v40 = vpop.f32.mrf.mxu1 }
 0x42a   :  { %v885_v41 = vpop.f32.mrf.mxu0  ;;  %v956_v44 = vpop.f32.mrf.mxu2 }
 0x42b   :  { %v886_v42 = vadd.f32 %v885_v41, %v3524_v32  ;;  %v1041_v59 = vpop.f32.mrf.mxu1 }
 0x42c   :  { %v983_v49 = vpop.f32.mrf.mxu3 }
 0x42d   :  { %v927_v43 = vadd.f32 %v926_v40, %v886_v42 }
 0x42f   :  { %v957_v46 = vadd.f32 %v956_v44, %v927_v43 }
 0x431   :  { %v984_v54 = vadd.f32 %v983_v49, %v957_v46 }
 0x432   :  { %v1016_v55 = vpop.f32.mrf.mxu0 }
 0x433   :  { %v1017_v58 = vadd.f32 %v1016_v55, %v984_v54 }
 0x435   :  { %v1042_v60 = vadd.f32 %v1041_v59, %v1017_v58 }
 0x437   :  { %v3328_v61 = vmul.f32 -1.442695, %v1042_v60 }
 0x439   :  { %3358 = vpow2.f32 %v3328_v61 }
 0x43f   :  { %v3359_v62 = vpop.eup %3358 }
 0x440   :  { %v1047_v63 = vadd.f32 1.0, %v3359_v62 }
 0x442   :  { %3360 = vrcp.f32 %v1047_v63  ;;  %v1059_v6 = vand.u32 2147483648, %v1047_v63  ;;  %v1057_v14 = vand.u32 2147483647, %v1047_v63  ;;  %vm1053_vm11 = vweird.f32 %v1047_v63 }
 0x444   :  { %v1060_v21 = vor.u32 1.1754944e-38, %v1059_v6  ;;  %vm1058_vm13 = vcmp.eq.f32.partialorder %v1057_v14, 8.507059e+37 }
 0x448   :  { %v3361_v0 = vpop.eup %3360 }
 0x449   :  { %v1049_v1 = vmul.f32 %v3361_v0, %v1047_v63  ;;  %vm1054_vm10 = vweird.f32 %v3361_v0 }
 0x44a   :  { %vm1055_vm12 = vmor %vm1053_vm11, %vm1054_vm10 }
 0x44b   :  { %v1050_v2 = vsub.f32 1.0, %v1049_v1 }
 0x44d   :  { %v1051_v7 = vmul.f32 %v3361_v0, %v1050_v2 }
 0x44f   :  { %v1052_v20 = vadd.f32 %v3361_v0, %v1051_v7 }
 0x451   :  { %v1056_v17 = vsel %vm1055_vm12, %v3361_v0, %v1052_v20  ;;  %v3330_v20 = vld [vmem:[%s4102_s0 + $0xc] sm:$0xf] }
 0x452   :  { %v1061_v33 = vsel %vm1058_vm13, %v1060_v21, %v1056_v17 }
 0x453   :  { %v1066_v36 = vmul.f32 %v1064_v23, %v1061_v33  ;;  %v1258_v2 = vsub.f32 1.0, %v1061_v33 }
 0x455   :  { %1068 = vrot.lane.b32.xlu2 %v1066_v36, %s3397_s9  ;;  %v1259_v7 = vmul.f32 %v1258_v2, %v3726_v9 }
 0x4af   :  { %v1069_v38 = vpop.permute.xlu2 %1068 }
 0x4b0   :  { %v1070_v39 = vsel %vm32_vm0, %v1069_v38, 0 }
 0x4b1   :  { %v1092_v40 = vand.u32 4294901760, %v1070_v39 }
 0x4b3   :  { %v1093_v41 = vsub.f32 %v1070_v39, %v1092_v40  ;;  %1138 = vmatmul.f32.vlgmr.msrb.gmra.mxu3 %v1092_v40 }
 0x4b4   :  { %1383 = vmatpush.msrb.mxu3 %v3437_v3 }
 0x4b5   :  { %v1094_v42 = vand.u32 4294901760, %v1093_v41  ;;  %1168 = vmatmul.f32.vlgmr.msra.gmra.mxu0 %v1093_v41 }
 0x4b6   :  { %1385 = vmatpush.msrb.mxu3 %v3439_v4  ;;  %1412 = vmatpush.msra.mxu0 %v3474_v15 }
 0x4b7   :  { %v1095_v43 = vsub.f32 %v1093_v41, %v1094_v42  ;;  %1195 = vmatmul.f32.vlgmr.msra.gmra.mxu1 %v1094_v42 }
 0x4b8   :  { %1387 = vmatpush.msrb.mxu3 %v3441_v5  ;;  %1443 = vmatpush.msra.mxu1 %v3437_v3 }
 0x4b9   :  { %v1096_v44 = vand.u32 4294901760, %v1095_v43  ;;  %1416 = vmatpush.msra.mxu0 %v3477_v16 }
 0x4ba   :  { %1389 = vmatpush.msrb.mxu3 %v3449_v8  ;;  %1445 = vmatpush.msra.mxu1 %v3439_v4 }
 0x4bb   :  { %1097 = vmatmul.f32.vlgmr.msrb.gmra.mxu2 %v1096_v44  ;;  %1253 = vmatmul.f32.vlgmr.msra.gmra.mxu3 %v1092_v40 }
 0x4bc   :  { %1354 = vmatpush.msrb.mxu2 %v3454_v10  ;;  %1447 = vmatpush.msra.mxu1 %v3441_v5 }
 0x4bd   :  { %1420 = vmatpush.msra.mxu0 %v3480_v18  ;;  %1529 = vmatpush.msra.mxu3 %v3559_v56 }
 0x4be   :  { %1357 = vmatpush.msrb.mxu2 %v3458_v11  ;;  %1449 = vmatpush.msra.mxu1 %v3449_v8 }
 0x4bf   :  { %1424 = vmatpush.msra.mxu0 %v3484_v19  ;;  %1535 = vmatpush.msra.mxu3 %v3561_v57 }
 0x4c0   :  { %1360 = vmatpush.msrb.mxu2 %v3462_v12 }
 0x4c1   :  { %1541 = vmatpush.msra.mxu3 %v3603_v35 }
 0x4c2   :  { %1363 = vmatpush.msrb.mxu2 %v3465_v13 }
 0x4c3   :  { %1228 = vmatmul.f32.vlgmr.msra.gmra.mxu2 %v1092_v40  ;;  %1547 = vmatpush.msra.mxu3 %v3611_v37 }
 0x4c4   :  { %1496 = vmatpush.msra.mxu2 %v3533_v47 }
 0x4c6   :  { %1498 = vmatpush.msra.mxu2 %v3535_v48 }
 0x4c8   :  { %1500 = vmatpush.msra.mxu2 %v3572_v22 }
 0x4ca   :  { %1502 = vmatpush.msra.mxu2 %v3580_v27 }
 0x532   :  { %v1169_v58 = vpop.f32.mrf.mxu0 }
 0x534   :  { %v1196_v60 = vpop.f32.mrf.mxu1 }
 0x536   :  { %v1139_v46 = vpop.f32.mrf.mxu3 }
 0x53e   :  { %v1098_v49 = vpop.f32.mrf.mxu2  ;;  %v1254_v0 = vpop.f32.mrf.mxu3 }
 0x53f   :  { %v1099_v54 = vadd.f32 %v1098_v49, %v3651_v45 }
 0x541   :  { %v1140_v55 = vadd.f32 %v1139_v46, %v1099_v54 }
 0x543   :  { %v1170_v59 = vadd.f32 %v1169_v58, %v1140_v55 }
 0x545   :  { %v1197_v61 = vadd.f32 %v1196_v60, %v1170_v59 }
 0x546   :  { %v1229_v62 = vpop.f32.mrf.mxu2 }
 0x547   :  { %v1230_v63 = vadd.f32 %v1229_v62, %v1197_v61 }
 0x549   :  { %v1255_v1 = vadd.f32 %v1254_v0, %v1230_v63 }
 0x54b   :  { %3362 = vtanh.f32 %v1255_v1 }
 0x551   :  { %v3363_v6 = vpop.eup %3362 }
 0x552   :  { %v1260_v14 = vmul.f32 %v3363_v6, %v1061_v33 }
 0x554   :  { %v1261_v21 = vadd.f32 %v1260_v14, %v1259_v7 }
 0x556   :  { %v3792_v17 = vmul.f32 %v3330_v20, %v1261_v21  ;;  %3329 = vst.msk [vmem:[%s4106_s5 + $0x14] sm:$0xf] %vm440_vm5, %v1261_v21 }
 0x558   :  { %1474 = vrot.lane.b32.xlu0 %v3792_v17, %s3396_s3  ;;  %v1268_v23 = vsel %vm32_vm0, %v3792_v17, 0 }
 0x559   :  { %v1290_v9 = vand.u32 4294901760, %v1268_v23 }
 0x55b   :  { %1336 = vmatmul.f32.vlgmr.msrb.gmra.mxu1 %v1290_v9  ;;  %v1291_v33 = vsub.f32 %v1268_v23, %v1290_v9 }
 0x55c   :  { %1596 = vmatpush.msrb.mxu1 %v3533_v47 }
 0x55d   :  { %1366 = vmatmul.f32.vlgmr.msrb.gmra.mxu2 %v1291_v33  ;;  %v1292_v36 = vand.u32 4294901760, %v1291_v33 }
 0x55e   :  { %1598 = vmatpush.msrb.mxu1 %v3535_v48  ;;  %1625 = vmatpush.msrb.mxu2 %v3546_v52 }
 0x55f   :  { %1393 = vmatmul.f32.vlgmr.msrb.gmra.mxu3 %v1292_v36  ;;  %v1293_v38 = vsub.f32 %v1291_v33, %v1292_v36 }
 0x560   :  { %1600 = vmatpush.msrb.mxu1 %v3572_v22  ;;  %1656 = vmatpush.msrb.mxu3 %v3533_v47 }
 0x561   :  { %v1294_v39 = vand.u32 4294901760, %v1293_v38  ;;  %1629 = vmatpush.msrb.mxu2 %v3549_v53 }
 0x562   :  { %1602 = vmatpush.msrb.mxu1 %v3580_v27  ;;  %1658 = vmatpush.msrb.mxu3 %v3535_v48 }
 0x563   :  { %1295 = vmatmul.f32.vlgmr.msrb.gmra.mxu0 %v1294_v39  ;;  %1451 = vmatmul.f32.vlgmr.msra.gmra.mxu1 %v1290_v9 }
 0x564   :  { %1567 = vmatpush.msrb.mxu0 %v3538_v50  ;;  %1660 = vmatpush.msrb.mxu3 %v3572_v22 }
 0x565   :  { %1633 = vmatpush.msrb.mxu2 %v3585_v29  ;;  %1727 = vmatpush.msra.mxu1 %v3495_v24 }
 0x566   :  { %1570 = vmatpush.msrb.mxu0 %v3541_v51  ;;  %1662 = vmatpush.msrb.mxu3 %v3580_v27 }
 0x567   :  { %1637 = vmatpush.msrb.mxu2 %v3597_v34  ;;  %1733 = vmatpush.msra.mxu1 %v3498_v25 }
 0x568   :  { %1573 = vmatpush.msrb.mxu0 %v3578_v26 }
 0x569   :  { %1739 = vmatpush.msra.mxu1 %v3507_v28 }
 0x56a   :  { %1576 = vmatpush.msrb.mxu0 %v3588_v30 }
 0x56b   :  { %1426 = vmatmul.f32.vlgmr.msra.gmra.mxu0 %v1290_v9  ;;  %1745 = vmatpush.msra.mxu1 %v3510_v31 }
 0x56c   :  { %1694 = vmatpush.msra.mxu0 %v3437_v3 }
 0x56e   :  { %1696 = vmatpush.msra.mxu0 %v3439_v4 }
 0x570   :  { %1698 = vmatpush.msra.mxu0 %v3441_v5 }
 0x572   :  { %1700 = vmatpush.msra.mxu0 %v3449_v8 }
 0x5ca   :  { %v1475_v23 = vpop.permute.xlu0 %1474 }
 0x5d8   :  { %v1337_v40 = vpop.f32.mrf.mxu1 }
 0x5e0   :  { %v1296_v41 = vpop.f32.mrf.mxu0  ;;  %v1367_v44 = vpop.f32.mrf.mxu2 }
 0x5e1   :  { %v1297_v42 = vadd.f32 %v1296_v41, %v3524_v32  ;;  %v1452_v59 = vpop.f32.mrf.mxu1 }
 0x5e2   :  { %v1394_v49 = vpop.f32.mrf.mxu3 }
 0x5e3   :  { %v1338_v43 = vadd.f32 %v1337_v40, %v1297_v42 }
 0x5e5   :  { %v1368_v46 = vadd.f32 %v1367_v44, %v1338_v43 }
 0x5e7   :  { %v1395_v54 = vadd.f32 %v1394_v49, %v1368_v46 }
 0x5e8   :  { %v1427_v55 = vpop.f32.mrf.mxu0 }
 0x5e9   :  { %v1428_v58 = vadd.f32 %v1427_v55, %v1395_v54 }
 0x5eb   :  { %v1453_v60 = vadd.f32 %v1452_v59, %v1428_v58 }
 0x5ed   :  { %v3331_v61 = vmul.f32 -1.442695, %v1453_v60 }
 0x5ef   :  { %3364 = vpow2.f32 %v3331_v61 }
 0x5f5   :  { %v3365_v62 = vpop.eup %3364 }
 0x5f6   :  { %v1458_v63 = vadd.f32 1.0, %v3365_v62 }
 0x5f8   :  { %3366 = vrcp.f32 %v1458_v63  ;;  %v1470_v6 = vand.u32 2147483648, %v1458_v63  ;;  %v1468_v32 = vand.u32 2147483647, %v1458_v63  ;;  %vm1464_vm15 = vweird.f32 %v1458_v63 }
 0x5fa   :  { %v1471_v20 = vor.u32 1.1754944e-38, %v1470_v6  ;;  %vm1469_vm2 = vcmp.eq.f32.partialorder %v1468_v32, 8.507059e+37  ;;  %v3333_v32 = vld [vmem:[%s4102_s0 + $0x10] sm:$0xf] }
 0x5fe   :  { %v3367_v0 = vpop.eup %3366 }
 0x5ff   :  { %v1460_v1 = vmul.f32 %v3367_v0, %v1458_v63  ;;  %vm1465_vm14 = vweird.f32 %v3367_v0 }
 0x600   :  { %vm1466_vm1 = vmor %vm1464_vm15, %vm1465_vm14 }
 0x601   :  { %v1461_v2 = vsub.f32 1.0, %v1460_v1 }
 0x603   :  { %v1462_v7 = vmul.f32 %v3367_v0, %v1461_v2 }
 0x605   :  { %v1463_v14 = vadd.f32 %v3367_v0, %v1462_v7 }
 0x607   :  { %v1467_v21 = vsel %vm1466_vm1, %v3367_v0, %v1463_v14 }
 0x608   :  { %v1472_v9 = vsel %vm1469_vm2, %v1471_v20, %v1467_v21 }
 0x609   :  { %v1477_v33 = vmul.f32 %v1475_v23, %v1472_v9  ;;  %v1669_v1 = vsub.f32 1.0, %v1472_v9 }
 0x60b   :  { %1479 = vrot.lane.b32.xlu1 %v1477_v33, %s3397_s9  ;;  %v1670_v6 = vmul.f32 %v1669_v1, %v3792_v17 }
 0x67d   :  { %v1480_v36 = vpop.permute.xlu1 %1479 }
 0x67e   :  { %v1481_v38 = vsel %vm32_vm0, %v1480_v36, 0 }
 0x67f   :  { %v1503_v39 = vand.u32 4294901760, %v1481_v38 }
 0x681   :  { %v1504_v40 = vsub.f32 %v1481_v38, %v1503_v39  ;;  %1549 = vmatmul.f32.vlgmr.msra.gmra.mxu3 %v1503_v39 }
 0x682   :  { %1794 = vmatpush.msra.mxu3 %v3437_v3 }
 0x683   :  { %v1505_v41 = vand.u32 4294901760, %v1504_v40  ;;  %1579 = vmatmul.f32.vlgmr.msrb.gmra.mxu0 %v1504_v40 }
 0x684   :  { %1796 = vmatpush.msra.mxu3 %v3439_v4  ;;  %1823 = vmatpush.msrb.mxu0 %v3474_v15 }
 0x685   :  { %v1506_v42 = vsub.f32 %v1504_v40, %v1505_v41  ;;  %1606 = vmatmul.f32.vlgmr.msrb.gmra.mxu1 %v1505_v41 }
 0x686   :  { %1798 = vmatpush.msra.mxu3 %v3441_v5  ;;  %1854 = vmatpush.msrb.mxu1 %v3437_v3 }
 0x687   :  { %v1507_v43 = vand.u32 4294901760, %v1506_v42  ;;  %1827 = vmatpush.msrb.mxu0 %v3477_v16 }
 0x688   :  { %1800 = vmatpush.msra.mxu3 %v3449_v8  ;;  %1856 = vmatpush.msrb.mxu1 %v3439_v4 }
 0x689   :  { %1508 = vmatmul.f32.vlgmr.msra.gmra.mxu2 %v1507_v43  ;;  %1664 = vmatmul.f32.vlgmr.msrb.gmra.mxu3 %v1503_v39 }
 0x68a   :  { %1765 = vmatpush.msra.mxu2 %v3454_v10  ;;  %1858 = vmatpush.msrb.mxu1 %v3441_v5 }
 0x68b   :  { %1831 = vmatpush.msrb.mxu0 %v3480_v18  ;;  %1940 = vmatpush.msrb.mxu3 %v3559_v56 }
 0x68c   :  { %1768 = vmatpush.msra.mxu2 %v3458_v11  ;;  %1860 = vmatpush.msrb.mxu1 %v3449_v8 }
 0x68d   :  { %1835 = vmatpush.msrb.mxu0 %v3484_v19  ;;  %1946 = vmatpush.msrb.mxu3 %v3561_v57 }
 0x68e   :  { %1771 = vmatpush.msra.mxu2 %v3462_v12 }
 0x68f   :  { %1952 = vmatpush.msrb.mxu3 %v3603_v35 }
 0x690   :  { %1774 = vmatpush.msra.mxu2 %v3465_v13 }
 0x691   :  { %1639 = vmatmul.f32.vlgmr.msrb.gmra.mxu2 %v1503_v39  ;;  %1958 = vmatpush.msrb.mxu3 %v3611_v37  ;;  %v3895_v39 = vld [vmem:[%s4103_s1] sm:$0xf] }
 0x692   :  { %1907 = vmatpush.msrb.mxu2 %v3533_v47 }
 0x694   :  { %1909 = vmatpush.msrb.mxu2 %v3535_v48 }
 0x696   :  { %1911 = vmatpush.msrb.mxu2 %v3572_v22 }
 0x698   :  { %1913 = vmatpush.msrb.mxu2 %v3580_v27 }
 0x700   :  { %v1580_v55 = vpop.f32.mrf.mxu0 }
 0x702   :  { %v1607_v59 = vpop.f32.mrf.mxu1 }
 0x704   :  { %v1550_v44 = vpop.f32.mrf.mxu3 }
 0x70c   :  { %v1509_v46 = vpop.f32.mrf.mxu2  ;;  %v1665_v63 = vpop.f32.mrf.mxu3 }
 0x70d   :  { %v1510_v49 = vadd.f32 %v1509_v46, %v3651_v45 }
 0x70f   :  { %v1551_v54 = vadd.f32 %v1550_v44, %v1510_v49 }
 0x711   :  { %v1581_v58 = vadd.f32 %v1580_v55, %v1551_v54 }
 0x713   :  { %v1608_v60 = vadd.f32 %v1607_v59, %v1581_v58 }
 0x714   :  { %v1640_v61 = vpop.f32.mrf.mxu2 }
 0x715   :  { %v1641_v62 = vadd.f32 %v1640_v61, %v1608_v60 }
 0x717   :  { %v1666_v0 = vadd.f32 %v1665_v63, %v1641_v62 }
 0x719   :  { %3368 = vtanh.f32 %v1666_v0 }
 0x71f   :  { %v3369_v2 = vpop.eup %3368 }
 0x720   :  { %v1671_v7 = vmul.f32 %v3369_v2, %v1472_v9 }
 0x722   :  { %v1672_v45 = vadd.f32 %v1671_v7, %v1670_v6 }
 0x724   :  { %v3858_v14 = vmul.f32 %v3333_v32, %v1672_v45  ;;  %3332 = vst.msk [vmem:[%s4106_s5 + $0x10] sm:$0xf] %vm440_vm5, %v1672_v45 }
 0x726   :  { %1885 = vrot.lane.b32.xlu2 %v3858_v14, %s3396_s3  ;;  %v1679_v20 = vsel %vm32_vm0, %v3858_v14, 0 }
 0x727   :  { %v1701_v17 = vand.u32 4294901760, %v1679_v20 }
 0x729   :  { %1747 = vmatmul.f32.vlgmr.msra.gmra.mxu1 %v1701_v17  ;;  %v1702_v21 = vsub.f32 %v1679_v20, %v1701_v17 }
 0x72a   :  { %2007 = vmatpush.msra.mxu1 %v3533_v47 }
 0x72b   :  { %1777 = vmatmul.f32.vlgmr.msra.gmra.mxu2 %v1702_v21  ;;  %v1703_v23 = vand.u32 4294901760, %v1702_v21 }
 0x72c   :  { %2009 = vmatpush.msra.mxu1 %v3535_v48  ;;  %2036 = vmatpush.msra.mxu2 %v3546_v52 }
 0x72d   :  { %1804 = vmatmul.f32.vlgmr.msra.gmra.mxu3 %v1703_v23  ;;  %v1704_v9 = vsub.f32 %v1702_v21, %v1703_v23 }
 0x72e   :  { %2011 = vmatpush.msra.mxu1 %v3572_v22  ;;  %2067 = vmatpush.msra.mxu3 %v3533_v47 }
 0x72f   :  { %v1705_v33 = vand.u32 4294901760, %v1704_v9  ;;  %2040 = vmatpush.msra.mxu2 %v3549_v53 }
 0x730   :  { %2013 = vmatpush.msra.mxu1 %v3580_v27  ;;  %2069 = vmatpush.msra.mxu3 %v3535_v48 }
 0x731   :  { %1706 = vmatmul.f32.vlgmr.msra.gmra.mxu0 %v1705_v33  ;;  %1862 = vmatmul.f32.vlgmr.msrb.gmra.mxu1 %v1701_v17 }
 0x732   :  { %1978 = vmatpush.msra.mxu0 %v3538_v50  ;;  %2071 = vmatpush.msra.mxu3 %v3572_v22 }
 0x733   :  { %2044 = vmatpush.msra.mxu2 %v3585_v29  ;;  %2138 = vmatpush.msrb.mxu1 %v3495_v24 }
 0x734   :  { %1981 = vmatpush.msra.mxu0 %v3541_v51  ;;  %2073 = vmatpush.msra.mxu3 %v3580_v27 }
 0x735   :  { %2048 = vmatpush.msra.mxu2 %v3597_v34  ;;  %2144 = vmatpush.msrb.mxu1 %v3498_v25 }
 0x736   :  { %1984 = vmatpush.msra.mxu0 %v3578_v26 }
 0x737   :  { %2150 = vmatpush.msrb.mxu1 %v3507_v28 }
 0x738   :  { %1987 = vmatpush.msra.mxu0 %v3588_v30 }
 0x739   :  { %1837 = vmatmul.f32.vlgmr.msrb.gmra.mxu0 %v1701_v17  ;;  %2156 = vmatpush.msrb.mxu1 %v3510_v31 }
 0x73a   :  { %2105 = vmatpush.msrb.mxu0 %v3437_v3 }
 0x73c   :  { %2107 = vmatpush.msrb.mxu0 %v3439_v4 }
 0x73e   :  { %2109 = vmatpush.msrb.mxu0 %v3441_v5 }
 0x740   :  { %2111 = vmatpush.msrb.mxu0 %v3449_v8 }
 0x780   :  { %v1886_v20 = vpop.permute.xlu2 %1885 }
 0x7a6   :  { %v1748_v36 = vpop.f32.mrf.mxu1 }
 0x7ae   :  { %v1707_v38 = vpop.f32.mrf.mxu0  ;;  %v1778_v42 = vpop.f32.mrf.mxu2 }
 0x7af   :  { %v1708_v40 = vadd.f32 %v3895_v39, %v1707_v38  ;;  %v1863_v55 = vpop.f32.mrf.mxu1 }
 0x7b0   :  { %v1805_v44 = vpop.f32.mrf.mxu3 }
 0x7b1   :  { %v1749_v41 = vadd.f32 %v1748_v36, %v1708_v40 }
 0x7b3   :  { %v1779_v43 = vadd.f32 %v1778_v42, %v1749_v41 }
 0x7b5   :  { %v1806_v46 = vadd.f32 %v1805_v44, %v1779_v43  ;;  %v3927_v44 = vld [vmem:[%s4105_s2] sm:$0xf] }
 0x7b6   :  { %v1838_v49 = vpop.f32.mrf.mxu0 }
 0x7b7   :  { %v1839_v54 = vadd.f32 %v1838_v49, %v1806_v46 }
 0x7b9   :  { %v1864_v58 = vadd.f32 %v1863_v55, %v1839_v54 }
 0x7bb   :  { %v3334_v59 = vmul.f32 -1.442695, %v1864_v58 }
 0x7bd   :  { %3370 = vpow2.f32 %v3334_v59 }
 0x7c3   :  { %v3371_v60 = vpop.eup %3370 }
 0x7c4   :  { %v1869_v61 = vadd.f32 1.0, %v3371_v60 }
 0x7c6   :  { %3372 = vrcp.f32 %v1869_v61  ;;  %v1881_v1 = vand.u32 2147483648, %v1869_v61  ;;  %v1879_v6 = vand.u32 2147483647, %v1869_v61  ;;  %vm1875_vm4 = vweird.f32 %v1869_v61 }
 0x7c8   :  { %v1882_v32 = vor.u32 1.1754944e-38, %v1881_v1  ;;  %vm1880_vm7 = vcmp.eq.f32.partialorder %v1879_v6, 8.507059e+37 }
 0x7cc   :  { %v3373_v62 = vpop.eup %3372 }
 0x7cd   :  { %v1871_v63 = vmul.f32 %v3373_v62, %v1869_v61  ;;  %vm1876_vm3 = vweird.f32 %v3373_v62 }
 0x7ce   :  { %vm1877_vm6 = vmor %vm1875_vm4, %vm1876_vm3 }
 0x7cf   :  { %v1872_v0 = vsub.f32 1.0, %v1871_v63 }
 0x7d1   :  { %v1873_v2 = vmul.f32 %v3373_v62, %v1872_v0 }
 0x7d3   :  { %v1874_v7 = vadd.f32 %v3373_v62, %v1873_v2 }
 0x7d5   :  { %v1878_v45 = vsel %vm1877_vm6, %v3373_v62, %v1874_v7  ;;  %v3336_v7 = vld [vmem:[%s4102_s0 + $0x14] sm:$0xf] }
 0x7d6   :  { %v1883_v17 = vsel %vm1880_vm7, %v1882_v32, %v1878_v45 }
 0x7d7   :  { %v1888_v21 = vmul.f32 %v1886_v20, %v1883_v17  ;;  %v2080_v0 = vsub.f32 1.0, %v1883_v17 }
 0x7d9   :  { %1890 = vrot.lane.b32.xlu0 %v1888_v21, %s3397_s9  ;;  %v2081_v2 = vmul.f32 %v2080_v0, %v3858_v14 }
 0x84b   :  { %v1891_v23 = vpop.permute.xlu0 %1890 }
 0x84c   :  { %v1892_v9 = vsel %vm32_vm0, %v1891_v23, 0 }
 0x84d   :  { %v1914_v33 = vand.u32 4294901760, %v1892_v9 }
 0x84f   :  { %v1915_v36 = vsub.f32 %v1892_v9, %v1914_v33  ;;  %1960 = vmatmul.f32.vlgmr.msrb.gmra.mxu3 %v1914_v33 }
 0x850   :  { %2205 = vmatpush.msrb.mxu3 %v3437_v3 }
 0x851   :  { %v1916_v38 = vand.u32 4294901760, %v1915_v36  ;;  %1990 = vmatmul.f32.vlgmr.msra.gmra.mxu0 %v1915_v36 }
 0x852   :  { %2207 = vmatpush.msrb.mxu3 %v3439_v4  ;;  %2234 = vmatpush.msra.mxu0 %v3474_v15 }
 0x853   :  { %v1917_v40 = vsub.f32 %v1915_v36, %v1916_v38  ;;  %2017 = vmatmul.f32.vlgmr.msra.gmra.mxu1 %v1916_v38 }
 0x854   :  { %2209 = vmatpush.msrb.mxu3 %v3441_v5  ;;  %2265 = vmatpush.msra.mxu1 %v3437_v3 }
 0x855   :  { %v1918_v41 = vand.u32 4294901760, %v1917_v40  ;;  %2238 = vmatpush.msra.mxu0 %v3477_v16 }
 0x856   :  { %2211 = vmatpush.msrb.mxu3 %v3449_v8  ;;  %2267 = vmatpush.msra.mxu1 %v3439_v4 }
 0x857   :  { %1919 = vmatmul.f32.vlgmr.msrb.gmra.mxu2 %v1918_v41  ;;  %2075 = vmatmul.f32.vlgmr.msra.gmra.mxu3 %v1914_v33 }
 0x858   :  { %2176 = vmatpush.msrb.mxu2 %v3454_v10  ;;  %2269 = vmatpush.msra.mxu1 %v3441_v5 }
 0x859   :  { %2242 = vmatpush.msra.mxu0 %v3480_v18  ;;  %2351 = vmatpush.msra.mxu3 %v3559_v56 }
 0x85a   :  { %2179 = vmatpush.msrb.mxu2 %v3458_v11  ;;  %2271 = vmatpush.msra.mxu1 %v3449_v8 }
 0x85b   :  { %2246 = vmatpush.msra.mxu0 %v3484_v19  ;;  %2357 = vmatpush.msra.mxu3 %v3561_v57 }
 0x85c   :  { %2182 = vmatpush.msrb.mxu2 %v3462_v12 }
 0x85d   :  { %2363 = vmatpush.msra.mxu3 %v3603_v35 }
 0x85e   :  { %2185 = vmatpush.msrb.mxu2 %v3465_v13 }
 0x85f   :  { %2050 = vmatmul.f32.vlgmr.msra.gmra.mxu2 %v1914_v33  ;;  %2369 = vmatpush.msra.mxu3 %v3611_v37 }
 0x860   :  { %2318 = vmatpush.msra.mxu2 %v3533_v47 }
 0x862   :  { %2320 = vmatpush.msra.mxu2 %v3535_v48 }
 0x864   :  { %2322 = vmatpush.msra.mxu2 %v3572_v22 }
 0x866   :  { %2324 = vmatpush.msra.mxu2 %v3580_v27 }
 0x8ce   :  { %v1991_v54 = vpop.f32.mrf.mxu0 }
 0x8d0   :  { %v2018_v58 = vpop.f32.mrf.mxu1 }
 0x8d2   :  { %v1961_v42 = vpop.f32.mrf.mxu3 }
 0x8da   :  { %v1920_v43 = vpop.f32.mrf.mxu2  ;;  %v2076_v62 = vpop.f32.mrf.mxu3 }
 0x8db   :  { %v1921_v46 = vadd.f32 %v3927_v44, %v1920_v43 }
 0x8dd   :  { %v1962_v49 = vadd.f32 %v1961_v42, %v1921_v46 }
 0x8df   :  { %v1992_v55 = vadd.f32 %v1991_v54, %v1962_v49 }
 0x8e1   :  { %v2019_v59 = vadd.f32 %v2018_v58, %v1992_v55 }
 0x8e2   :  { %v2051_v60 = vpop.f32.mrf.mxu2 }
 0x8e3   :  { %v2052_v61 = vadd.f32 %v2051_v60, %v2019_v59 }
 0x8e5   :  { %v2077_v63 = vadd.f32 %v2076_v62, %v2052_v61 }
 0x8e7   :  { %3374 = vtanh.f32 %v2077_v63 }
 0x8ed   :  { %v3375_v1 = vpop.eup %3374 }
 0x8ee   :  { %v2082_v6 = vmul.f32 %v3375_v1, %v1883_v17 }
 0x8f0   :  { %v2083_v32 = vadd.f32 %v2082_v6, %v2081_v2 }
 0x8f2   :  { %v3934_v45 = vmul.f32 %v3336_v7, %v2083_v32  ;;  %3335 = vst.msk [vmem:[%s4106_s5 + $0xc] sm:$0xf] %vm440_vm5, %v2083_v32 }
 0x8f4   :  { %2296 = vrot.lane.b32.xlu1 %v3934_v45, %s3396_s3  ;;  %v2090_v20 = vsel %vm32_vm0, %v3934_v45, 0 }
 0x8f5   :  { %v2112_v14 = vand.u32 4294901760, %v2090_v20 }
 0x8f7   :  { %2158 = vmatmul.f32.vlgmr.msrb.gmra.mxu1 %v2112_v14  ;;  %v2113_v17 = vsub.f32 %v2090_v20, %v2112_v14 }
 0x8f8   :  { %2418 = vmatpush.msrb.mxu1 %v3533_v47 }
 0x8f9   :  { %2188 = vmatmul.f32.vlgmr.msrb.gmra.mxu2 %v2113_v17  ;;  %v2114_v21 = vand.u32 4294901760, %v2113_v17 }
 0x8fa   :  { %2420 = vmatpush.msrb.mxu1 %v3535_v48  ;;  %2447 = vmatpush.msrb.mxu2 %v3546_v52 }
 0x8fb   :  { %2215 = vmatmul.f32.vlgmr.msrb.gmra.mxu3 %v2114_v21  ;;  %v2115_v23 = vsub.f32 %v2113_v17, %v2114_v21 }
 0x8fc   :  { %2422 = vmatpush.msrb.mxu1 %v3572_v22  ;;  %2478 = vmatpush.msrb.mxu3 %v3533_v47 }
 0x8fd   :  { %v2116_v9 = vand.u32 4294901760, %v2115_v23  ;;  %2451 = vmatpush.msrb.mxu2 %v3549_v53 }
 0x8fe   :  { %2424 = vmatpush.msrb.mxu1 %v3580_v27  ;;  %2480 = vmatpush.msrb.mxu3 %v3535_v48 }
 0x8ff   :  { %2117 = vmatmul.f32.vlgmr.msrb.gmra.mxu0 %v2116_v9  ;;  %2273 = vmatmul.f32.vlgmr.msra.gmra.mxu1 %v2112_v14 }
 0x900   :  { %2389 = vmatpush.msrb.mxu0 %v3538_v50  ;;  %2482 = vmatpush.msrb.mxu3 %v3572_v22 }
 0x901   :  { %2455 = vmatpush.msrb.mxu2 %v3585_v29  ;;  %2549 = vmatpush.msra.mxu1 %v3495_v24 }
 0x902   :  { %2392 = vmatpush.msrb.mxu0 %v3541_v51  ;;  %2484 = vmatpush.msrb.mxu3 %v3580_v27 }
 0x903   :  { %2459 = vmatpush.msrb.mxu2 %v3597_v34  ;;  %2555 = vmatpush.msra.mxu1 %v3498_v25 }
 0x904   :  { %2395 = vmatpush.msrb.mxu0 %v3578_v26 }
 0x905   :  { %2561 = vmatpush.msra.mxu1 %v3507_v28 }
 0x906   :  { %2398 = vmatpush.msrb.mxu0 %v3588_v30 }
 0x907   :  { %2248 = vmatmul.f32.vlgmr.msra.gmra.mxu0 %v2112_v14  ;;  %2567 = vmatpush.msra.mxu1 %v3510_v31 }
 0x908   :  { %2516 = vmatpush.msra.mxu0 %v3437_v3 }
 0x90a   :  { %2518 = vmatpush.msra.mxu0 %v3439_v4 }
 0x90c   :  { %2520 = vmatpush.msra.mxu0 %v3441_v5 }
 0x90e   :  { %2522 = vmatpush.msra.mxu0 %v3449_v8 }
 0x966   :  { %v2297_v14 = vpop.permute.xlu1 %2296 }
 0x974   :  { %v2159_v33 = vpop.f32.mrf.mxu1 }
 0x97c   :  { %v2118_v36 = vpop.f32.mrf.mxu0  ;;  %v2189_v41 = vpop.f32.mrf.mxu2 }
 0x97d   :  { %v2119_v38 = vadd.f32 %v3895_v39, %v2118_v36  ;;  %v2274_v55 = vpop.f32.mrf.mxu1 }
 0x97e   :  { %v2216_v43 = vpop.f32.mrf.mxu3 }
 0x97f   :  { %v2160_v40 = vadd.f32 %v2159_v33, %v2119_v38 }
 0x981   :  { %v2190_v42 = vadd.f32 %v2189_v41, %v2160_v40 }
 0x983   :  { %v2217_v46 = vadd.f32 %v2216_v43, %v2190_v42 }
 0x984   :  { %v2249_v49 = vpop.f32.mrf.mxu0 }
 0x985   :  { %v2250_v54 = vadd.f32 %v2249_v49, %v2217_v46 }
 0x987   :  { %v2275_v58 = vadd.f32 %v2274_v55, %v2250_v54 }
 0x989   :  { %v3337_v59 = vmul.f32 -1.442695, %v2275_v58 }
 0x98b   :  { %3376 = vpow2.f32 %v3337_v59 }
 0x991   :  { %v3377_v60 = vpop.eup %3376 }
 0x992   :  { %v2280_v61 = vadd.f32 1.0, %v3377_v60 }
 0x994   :  { %3378 = vrcp.f32 %v2280_v61  ;;  %v2292_v1 = vand.u32 2147483648, %v2280_v61  ;;  %v2290_v6 = vand.u32 2147483647, %v2280_v61  ;;  %vm2286_vm9 = vweird.f32 %v2280_v61 }
 0x996   :  { %v2293_v32 = vor.u32 1.1754944e-38, %v2292_v1  ;;  %vm2291_vm11 = vcmp.eq.f32.partialorder %v2290_v6, 8.507059e+37 }
 0x99a   :  { %v3379_v62 = vpop.eup %3378 }
 0x99b   :  { %v2282_v63 = vmul.f32 %v3379_v62, %v2280_v61  ;;  %vm2287_vm8 = vweird.f32 %v3379_v62 }
 0x99c   :  { %vm2288_vm10 = vmor %vm2286_vm9, %vm2287_vm8 }
 0x99d   :  { %v2283_v0 = vsub.f32 1.0, %v2282_v63 }
 0x99f   :  { %v2284_v2 = vmul.f32 %v3379_v62, %v2283_v0 }
 0x9a1   :  { %v2285_v7 = vadd.f32 %v3379_v62, %v2284_v2 }
 0x9a3   :  { %v2289_v20 = vsel %vm2288_vm10, %v3379_v62, %v2285_v7  ;;  %v3339_v7 = vld [vmem:[%s4102_s0 + $0x18] sm:$0xf] }
 0x9a4   :  { %v2294_v17 = vsel %vm2291_vm11, %v2293_v32, %v2289_v20 }
 0x9a5   :  { %v2299_v21 = vmul.f32 %v2297_v14, %v2294_v17  ;;  %v2491_v0 = vsub.f32 1.0, %v2294_v17 }
 0x9a7   :  { %2301 = vrot.lane.b32.xlu2 %v2299_v21, %s3397_s9  ;;  %v2492_v2 = vmul.f32 %v2491_v0, %v3934_v45 }
 0xa01   :  { %v2302_v23 = vpop.permute.xlu2 %2301 }
 0xa02   :  { %v2303_v9 = vsel %vm32_vm0, %v2302_v23, 0 }
 0xa03   :  { %v2325_v33 = vand.u32 4294901760, %v2303_v9 }
 0xa05   :  { %v2326_v36 = vsub.f32 %v2303_v9, %v2325_v33  ;;  %2371 = vmatmul.f32.vlgmr.msra.gmra.mxu3 %v2325_v33 }
 0xa06   :  { %2616 = vmatpush.msra.mxu3 %v3437_v3 }
 0xa07   :  { %v2327_v38 = vand.u32 4294901760, %v2326_v36  ;;  %2401 = vmatmul.f32.vlgmr.msrb.gmra.mxu0 %v2326_v36 }
 0xa08   :  { %2618 = vmatpush.msra.mxu3 %v3439_v4  ;;  %2645 = vmatpush.msrb.mxu0 %v3474_v15 }
 0xa09   :  { %v2328_v40 = vsub.f32 %v2326_v36, %v2327_v38  ;;  %2428 = vmatmul.f32.vlgmr.msrb.gmra.mxu1 %v2327_v38 }
 0xa0a   :  { %2620 = vmatpush.msra.mxu3 %v3441_v5  ;;  %2676 = vmatpush.msrb.mxu1 %v3437_v3 }
 0xa0b   :  { %v2329_v41 = vand.u32 4294901760, %v2328_v40  ;;  %2649 = vmatpush.msrb.mxu0 %v3477_v16 }
 0xa0c   :  { %2622 = vmatpush.msra.mxu3 %v3449_v8  ;;  %2678 = vmatpush.msrb.mxu1 %v3439_v4 }
 0xa0d   :  { %2330 = vmatmul.f32.vlgmr.msra.gmra.mxu2 %v2329_v41  ;;  %2486 = vmatmul.f32.vlgmr.msrb.gmra.mxu3 %v2325_v33 }
 0xa0e   :  { %2587 = vmatpush.msra.mxu2 %v3454_v10  ;;  %2680 = vmatpush.msrb.mxu1 %v3441_v5 }
 0xa0f   :  { %2653 = vmatpush.msrb.mxu0 %v3480_v18  ;;  %2762 = vmatpush.msrb.mxu3 %v3559_v56 }
 0xa10   :  { %2590 = vmatpush.msra.mxu2 %v3458_v11  ;;  %2682 = vmatpush.msrb.mxu1 %v3449_v8 }
 0xa11   :  { %2657 = vmatpush.msrb.mxu0 %v3484_v19  ;;  %2768 = vmatpush.msrb.mxu3 %v3561_v57 }
 0xa12   :  { %2593 = vmatpush.msra.mxu2 %v3462_v12 }
 0xa13   :  { %2774 = vmatpush.msrb.mxu3 %v3603_v35 }
 0xa14   :  { %2596 = vmatpush.msra.mxu2 %v3465_v13 }
 0xa15   :  { %2461 = vmatmul.f32.vlgmr.msrb.gmra.mxu2 %v2325_v33  ;;  %2780 = vmatpush.msrb.mxu3 %v3611_v37 }
 0xa16   :  { %2729 = vmatpush.msrb.mxu2 %v3533_v47 }
 0xa18   :  { %2731 = vmatpush.msrb.mxu2 %v3535_v48 }
 0xa1a   :  { %2733 = vmatpush.msrb.mxu2 %v3572_v22 }
 0xa1c   :  { %2735 = vmatpush.msrb.mxu2 %v3580_v27 }
 0xa84   :  { %v2402_v54 = vpop.f32.mrf.mxu0 }
 0xa86   :  { %v2429_v58 = vpop.f32.mrf.mxu1 }
 0xa88   :  { %v2372_v42 = vpop.f32.mrf.mxu3 }
 0xa90   :  { %v2331_v43 = vpop.f32.mrf.mxu2  ;;  %v2487_v62 = vpop.f32.mrf.mxu3 }
 0xa91   :  { %v2332_v46 = vadd.f32 %v3927_v44, %v2331_v43 }
 0xa93   :  { %v2373_v49 = vadd.f32 %v2372_v42, %v2332_v46 }
 0xa95   :  { %v2403_v55 = vadd.f32 %v2402_v54, %v2373_v49 }
 0xa97   :  { %v2430_v59 = vadd.f32 %v2429_v58, %v2403_v55 }
 0xa98   :  { %v2462_v60 = vpop.f32.mrf.mxu2 }
 0xa99   :  { %v2463_v61 = vadd.f32 %v2462_v60, %v2430_v59 }
 0xa9b   :  { %v2488_v63 = vadd.f32 %v2487_v62, %v2463_v61 }
 0xa9d   :  { %3380 = vtanh.f32 %v2488_v63 }
 0xaa3   :  { %v3381_v1 = vpop.eup %3380 }
 0xaa4   :  { %v2493_v6 = vmul.f32 %v3381_v1, %v2294_v17 }
 0xaa6   :  { %v2494_v32 = vadd.f32 %v2493_v6, %v2492_v2 }
 0xaa8   :  { %v4000_v20 = vmul.f32 %v3339_v7, %v2494_v32  ;;  %3338 = vst.msk [vmem:[%s4106_s5 + $0x8] sm:$0xf] %vm440_vm5, %v2494_v32 }
 0xaaa   :  { %2707 = vrot.lane.b32.xlu0 %v4000_v20, %s3396_s3  ;;  %v2501_v14 = vsel %vm32_vm0, %v4000_v20, 0 }
 0xaab   :  { %v2523_v45 = vand.u32 4294901760, %v2501_v14 }
 0xaad   :  { %2569 = vmatmul.f32.vlgmr.msra.gmra.mxu1 %v2523_v45  ;;  %v2524_v17 = vsub.f32 %v2501_v14, %v2523_v45 }
 0xaae   :  { %2829 = vmatpush.msra.mxu1 %v3533_v47 }
 0xaaf   :  { %2599 = vmatmul.f32.vlgmr.msra.gmra.mxu2 %v2524_v17  ;;  %v2525_v21 = vand.u32 4294901760, %v2524_v17 }
 0xab0   :  { %2831 = vmatpush.msra.mxu1 %v3535_v48  ;;  %2858 = vmatpush.msra.mxu2 %v3546_v52 }
 0xab1   :  { %2626 = vmatmul.f32.vlgmr.msra.gmra.mxu3 %v2525_v21  ;;  %v2526_v23 = vsub.f32 %v2524_v17, %v2525_v21 }
 0xab2   :  { %2833 = vmatpush.msra.mxu1 %v3572_v22  ;;  %2889 = vmatpush.msra.mxu3 %v3533_v47 }
 0xab3   :  { %v2527_v9 = vand.u32 4294901760, %v2526_v23  ;;  %2862 = vmatpush.msra.mxu2 %v3549_v53 }
 0xab4   :  { %2835 = vmatpush.msra.mxu1 %v3580_v27  ;;  %2891 = vmatpush.msra.mxu3 %v3535_v48 }
 0xab5   :  { %2528 = vmatmul.f32.vlgmr.msra.gmra.mxu0 %v2527_v9  ;;  %2684 = vmatmul.f32.vlgmr.msrb.gmra.mxu1 %v2523_v45 }
 0xab6   :  { %2800 = vmatpush.msra.mxu0 %v3538_v50  ;;  %2893 = vmatpush.msra.mxu3 %v3572_v22 }
 0xab7   :  { %2866 = vmatpush.msra.mxu2 %v3585_v29  ;;  %2960 = vmatpush.msrb.mxu1 %v3495_v24 }
 0xab8   :  { %2803 = vmatpush.msra.mxu0 %v3541_v51  ;;  %2895 = vmatpush.msra.mxu3 %v3580_v27 }
 0xab9   :  { %2870 = vmatpush.msra.mxu2 %v3597_v34  ;;  %2966 = vmatpush.msrb.mxu1 %v3498_v25 }
 0xaba   :  { %2806 = vmatpush.msra.mxu0 %v3578_v26 }
 0xabb   :  { %2972 = vmatpush.msrb.mxu1 %v3507_v28 }
 0xabc   :  { %2809 = vmatpush.msra.mxu0 %v3588_v30 }
 0xabd   :  { %2659 = vmatmul.f32.vlgmr.msrb.gmra.mxu0 %v2523_v45  ;;  %2978 = vmatpush.msrb.mxu1 %v3510_v31 }
 0xabe   :  { %2927 = vmatpush.msrb.mxu0 %v3437_v3 }
 0xac0   :  { %2929 = vmatpush.msrb.mxu0 %v3439_v4 }
 0xac2   :  { %2931 = vmatpush.msrb.mxu0 %v3441_v5 }
 0xac4   :  { %2933 = vmatpush.msrb.mxu0 %v3449_v8 }
 0xb1c   :  { %v2708_v6 = vpop.permute.xlu0 %2707 }
 0xb2a   :  { %v2570_v24 = vpop.f32.mrf.mxu1 }
 0xb32   :  { %v2529_v33 = vpop.f32.mrf.mxu0  ;;  %v2600_v38 = vpop.f32.mrf.mxu2 }
 0xb33   :  { %v2530_v25 = vadd.f32 %v3895_v39, %v2529_v33  ;;  %v2685_v31 = vpop.f32.mrf.mxu1  ;;  %v3342_v33 = vld [vmem:[%s4102_s0 + $0x1c] sm:$0xf] }
 0xb34   :  { %v2627_v40 = vpop.f32.mrf.mxu3 }
 0xb35   :  { %v2571_v36 = vadd.f32 %v2570_v24, %v2530_v25 }
 0xb37   :  { %v2601_v28 = vadd.f32 %v2600_v38, %v2571_v36 }
 0xb39   :  { %v2628_v41 = vadd.f32 %v2627_v40, %v2601_v28 }
 0xb3a   :  { %v2660_v42 = vpop.f32.mrf.mxu0 }
 0xb3b   :  { %v2661_v43 = vadd.f32 %v2660_v42, %v2628_v41 }
 0xb3d   :  { %v2686_v46 = vadd.f32 %v2685_v31, %v2661_v43 }
 0xb3f   :  { %v3340_v49 = vmul.f32 -1.442695, %v2686_v46 }
 0xb41   :  { %3382 = vpow2.f32 %v3340_v49 }
 0xb47   :  { %v3383_v54 = vpop.eup %3382 }
 0xb48   :  { %v2691_v55 = vadd.f32 1.0, %v3383_v54 }
 0xb4a   :  { %3384 = vrcp.f32 %v2691_v55  ;;  %v2703_v61 = vand.u32 2147483648, %v2691_v55  ;;  %v2701_v63 = vand.u32 2147483647, %v2691_v55  ;;  %vm2697_vm13 = vweird.f32 %v2691_v55 }
 0xb4c   :  { %v2704_v1 = vor.u32 1.1754944e-38, %v2703_v61  ;;  %vm2702_vm15 = vcmp.eq.f32.partialorder %v2701_v63, 8.507059e+37 }
 0xb50   :  { %v3385_v58 = vpop.eup %3384 }
 0xb51   :  { %v2693_v59 = vmul.f32 %v3385_v58, %v2691_v55  ;;  %vm2698_vm12 = vweird.f32 %v3385_v58 }
 0xb52   :  { %vm2699_vm14 = vmor %vm2697_vm13, %vm2698_vm12 }
 0xb53   :  { %v2694_v60 = vsub.f32 1.0, %v2693_v59 }
 0xb55   :  { %v2695_v62 = vmul.f32 %v3385_v58, %v2694_v60 }
 0xb57   :  { %v2696_v0 = vadd.f32 %v3385_v58, %v2695_v62 }
 0xb59   :  { %v2700_v2 = vsel %vm2699_vm14, %v3385_v58, %v2696_v0 }
 0xb5a   :  { %v2705_v7 = vsel %vm2702_vm15, %v2704_v1, %v2700_v2 }
 0xb5b   :  { %v2710_v32 = vmul.f32 %v2708_v6, %v2705_v7 }
 0xb5d   :  { %2712 = vrot.lane.b32.xlu1 %v2710_v32, %s3397_s9 }
 0xbcf   :  { %v2713_v14 = vpop.permute.xlu1 %2712 }
 0xbd0   :  { %v2714_v45 = vsel %vm32_vm0, %v2713_v14, 0 }
 0xbd1   :  { %v2736_v17 = vand.u32 4294901760, %v2714_v45 }
 0xbd3   :  { %v2737_v21 = vsub.f32 %v2714_v45, %v2736_v17  ;;  %2782 = vmatmul.f32.vlgmr.msrb.gmra.mxu3 %v2736_v17 }
 0xbd4   :  { %3027 = vmatpush.msrb.mxu3 %v3437_v3 }
 0xbd5   :  { %v2738_v23 = vand.u32 4294901760, %v2737_v21  ;;  %2812 = vmatmul.f32.vlgmr.msra.gmra.mxu0 %v2737_v21 }
 0xbd6   :  { %3029 = vmatpush.msrb.mxu3 %v3439_v4  ;;  %3056 = vmatpush.msra.mxu0 %v3474_v15 }
 0xbd7   :  { %v2739_v9 = vsub.f32 %v2737_v21, %v2738_v23  ;;  %2839 = vmatmul.f32.vlgmr.msra.gmra.mxu1 %v2738_v23 }
 0xbd8   :  { %3031 = vmatpush.msrb.mxu3 %v3441_v5  ;;  %3087 = vmatpush.msra.mxu1 %v3437_v3 }
 0xbd9   :  { %v2740_v24 = vand.u32 4294901760, %v2739_v9  ;;  %3060 = vmatpush.msra.mxu0 %v3477_v16 }
 0xbda   :  { %3033 = vmatpush.msrb.mxu3 %v3449_v8  ;;  %3089 = vmatpush.msra.mxu1 %v3439_v4 }
 0xbdb   :  { %2741 = vmatmul.f32.vlgmr.msrb.gmra.mxu2 %v2740_v24  ;;  %2897 = vmatmul.f32.vlgmr.msra.gmra.mxu3 %v2736_v17 }
 0xbdc   :  { %2998 = vmatpush.msrb.mxu2 %v3454_v10  ;;  %3091 = vmatpush.msra.mxu1 %v3441_v5 }
 0xbdd   :  { %3064 = vmatpush.msra.mxu0 %v3480_v18  ;;  %3173 = vmatpush.msra.mxu3 %v3559_v56  ;;  %v2902_v56 = vsub.f32 1.0, %v2705_v7 }
 0xbde   :  { %3001 = vmatpush.msrb.mxu2 %v3458_v11  ;;  %3093 = vmatpush.msra.mxu1 %v3449_v8 }
 0xbdf   :  { %3068 = vmatpush.msra.mxu0 %v3484_v19  ;;  %3179 = vmatpush.msra.mxu3 %v3561_v57 }
 0xbe0   :  { %3004 = vmatpush.msrb.mxu2 %v3462_v12 }
 0xbe1   :  { %3185 = vmatpush.msra.mxu3 %v3603_v35  ;;  %v2903_v35 = vmul.f32 %v2902_v56, %v4000_v20 }
 0xbe2   :  { %3007 = vmatpush.msrb.mxu2 %v3465_v13 }
 0xbe3   :  { %2872 = vmatmul.f32.vlgmr.msra.gmra.mxu2 %v2736_v17  ;;  %3191 = vmatpush.msra.mxu3 %v3611_v37 }
 0xbe4   :  { %3140 = vmatpush.msra.mxu2 %v3533_v47 }
 0xbe6   :  { %3142 = vmatpush.msra.mxu2 %v3535_v48 }
 0xbe8   :  { %3144 = vmatpush.msra.mxu2 %v3572_v22 }
 0xbea   :  { %3146 = vmatpush.msra.mxu2 %v3580_v27 }
 0xc52   :  { %v2813_v10 = vpop.f32.mrf.mxu0 }
 0xc54   :  { %v2840_v12 = vpop.f32.mrf.mxu1 }
 0xc56   :  { %v2783_v3 = vpop.f32.mrf.mxu3 }
 0xc5e   :  { %v2742_v4 = vpop.f32.mrf.mxu2  ;;  %v2898_v18 = vpop.f32.mrf.mxu3 }
 0xc5f   :  { %v2743_v5 = vadd.f32 %v3927_v44, %v2742_v4 }
 0xc61   :  { %v2784_v8 = vadd.f32 %v2783_v3, %v2743_v5 }
 0xc63   :  { %v2814_v11 = vadd.f32 %v2813_v10, %v2784_v8 }
 0xc65   :  { %v2841_v13 = vadd.f32 %v2840_v12, %v2814_v11 }
 0xc66   :  { %v2873_v15 = vpop.f32.mrf.mxu2 }
 0xc67   :  { %v2874_v16 = vadd.f32 %v2873_v15, %v2841_v13 }
 0xc69   :  { %v2899_v19 = vadd.f32 %v2898_v18, %v2874_v16 }
 0xc6b   :  { %3386 = vtanh.f32 %v2899_v19 }
 0xc71   :  { %v3387_v57 = vpop.eup %3386 }
 0xc72   :  { %v2904_v37 = vmul.f32 %v3387_v57, %v2705_v7 }
 0xc74   :  { %v2905_v25 = vadd.f32 %v2904_v37, %v2903_v35 }
 0xc76   :  { %v4066_v36 = vmul.f32 %v3342_v33, %v2905_v25  ;;  %3341 = vst.msk [vmem:[%s4106_s5 + $0x4] sm:$0xf] %vm440_vm5, %v2905_v25 }
 0xc78   :  { %3118 = vrot.lane.b32.xlu2 %v4066_v36, %s3396_s3  ;;  %v2912_v38 = vsel %vm32_vm0, %v4066_v36, 0 }
 0xc79   :  { %v2934_v20 = vand.u32 4294901760, %v2912_v38 }
 0xc7b   :  { %2980 = vmatmul.f32.vlgmr.msrb.gmra.mxu1 %v2934_v20  ;;  %v2935_v28 = vsub.f32 %v2912_v38, %v2934_v20 }
 0xc7c   :  { %3240 = vmatpush.msrb.mxu1 %v3533_v47 }
 0xc7d   :  { %3010 = vmatmul.f32.vlgmr.msrb.gmra.mxu2 %v2935_v28  ;;  %v2936_v40 = vand.u32 4294901760, %v2935_v28 }
 0xc7e   :  { %3242 = vmatpush.msrb.mxu1 %v3535_v48  ;;  %3269 = vmatpush.msrb.mxu2 %v3546_v52 }
 0xc7f   :  { %3037 = vmatmul.f32.vlgmr.msrb.gmra.mxu3 %v2936_v40  ;;  %v2937_v41 = vsub.f32 %v2935_v28, %v2936_v40 }
 0xc80   :  { %3244 = vmatpush.msrb.mxu1 %v3572_v22  ;;  %3300 = vmatpush.msrb.mxu3 %v3533_v47 }
 0xc81   :  { %v2938_v42 = vand.u32 4294901760, %v2937_v41  ;;  %3273 = vmatpush.msrb.mxu2 %v3549_v53 }
 0xc82   :  { %3246 = vmatpush.msrb.mxu1 %v3580_v27  ;;  %3302 = vmatpush.msrb.mxu3 %v3535_v48 }
 0xc83   :  { %2939 = vmatmul.f32.vlgmr.msrb.gmra.mxu0 %v2938_v42  ;;  %3095 = vmatmul.f32.vlgmr.msra.gmra.mxu1 %v2934_v20 }
 0xc84   :  { %3211 = vmatpush.msrb.mxu0 %v3538_v50  ;;  %3304 = vmatpush.msrb.mxu3 %v3572_v22 }
 0xc85   :  { %3277 = vmatpush.msrb.mxu2 %v3585_v29 }
 0xc86   :  { %3214 = vmatpush.msrb.mxu0 %v3541_v51  ;;  %3306 = vmatpush.msrb.mxu3 %v3580_v27 }
 0xc87   :  { %3281 = vmatpush.msrb.mxu2 %v3597_v34 }
 0xc88   :  { %3217 = vmatpush.msrb.mxu0 %v3578_v26 }
 0xc8a   :  { %3220 = vmatpush.msrb.mxu0 %v3588_v30 }
 0xc8b   :  { %3070 = vmatmul.f32.vlgmr.msra.gmra.mxu0 %v2934_v20 }
 0xcd2   :  { %v3119_v63 = vpop.permute.xlu2 %3118 }
 0xcf8   :  { %v2981_v47 = vpop.f32.mrf.mxu1 }
 0xd00   :  { %v2940_v48 = vpop.f32.mrf.mxu0  ;;  %v3011_v53 = vpop.f32.mrf.mxu2 }
 0xd01   :  { %v2941_v52 = vadd.f32 %v3895_v39, %v2940_v48  ;;  %v3096_v46 = vpop.f32.mrf.mxu1 }
 0xd02   :  { %v3038_v43 = vpop.f32.mrf.mxu3 }
 0xd03   :  { %v2982_v50 = vadd.f32 %v2981_v47, %v2941_v52 }
 0xd05   :  { %v3012_v22 = vadd.f32 %v3011_v53, %v2982_v50 }
 0xd07   :  { %v3039_v29 = vadd.f32 %v3038_v43, %v3012_v22 }
 0xd08   :  { %v3071_v31 = vpop.f32.mrf.mxu0 }
 0xd09   :  { %v3072_v51 = vadd.f32 %v3071_v31, %v3039_v29 }
 0xd0b   :  { %v3097_v27 = vadd.f32 %v3096_v46, %v3072_v51 }
 0xd0d   :  { %v3343_v49 = vmul.f32 -1.442695, %v3097_v27 }
 0xd0f   :  { %3388 = vpow2.f32 %v3343_v49 }
 0xd15   :  { %v3389_v34 = vpop.eup %3388 }
 0xd16   :  { %v3102_v26 = vadd.f32 1.0, %v3389_v34 }
 0xd18   :  { %3390 = vrcp.f32 %v3102_v26  ;;  %v3114_v58 = vand.u32 2147483648, %v3102_v26  ;;  %v3112_v39 = vand.u32 2147483647, %v3102_v26  ;;  %vm3108_vm2 = vweird.f32 %v3102_v26 }
 0xd1a   :  { %v3115_v61 = vor.u32 1.1754944e-38, %v3114_v58  ;;  %vm3113_vm4 = vcmp.eq.f32.partialorder %v3112_v39, 8.507059e+37 }
 0xd1e   :  { %v3391_v30 = vpop.eup %3390 }
 0xd1f   :  { %v3104_v54 = vmul.f32 %v3391_v30, %v3102_v26  ;;  %vm3109_vm1 = vweird.f32 %v3391_v30 }
 0xd20   :  { %vm3110_vm3 = vmor %vm3108_vm2, %vm3109_vm1 }
 0xd21   :  { %v3105_v55 = vsub.f32 1.0, %v3104_v54 }
 0xd23   :  { %v3106_v59 = vmul.f32 %v3391_v30, %v3105_v55 }
 0xd25   :  { %v3107_v60 = vadd.f32 %v3391_v30, %v3106_v59 }
 0xd27   :  { %v3111_v62 = vsel %vm3110_vm3, %v3391_v30, %v3107_v60 }
 0xd28   :  { %v3116_v0 = vsel %vm3113_vm4, %v3115_v61, %v3111_v62 }
 0xd29   :  { %v3121_v1 = vmul.f32 %v3119_v63, %v3116_v0  ;;  %v3313_v15 = vsub.f32 1.0, %v3116_v0 }
 0xd2b   :  { %3123 = vrot.lane.b32.xlu0 %v3121_v1, %s3397_s9  ;;  %v3314_v18 = vmul.f32 %v3313_v15, %v4066_v36 }
 0xd9d   :  { %v3124_v2 = vpop.permute.xlu0 %3123 }
 0xd9e   :  { %v3125_v6 = vsel %vm32_vm0, %v3124_v2, 0 }
 0xd9f   :  { %v3147_v7 = vand.u32 4294901760, %v3125_v6 }
 0xda1   :  { %v3148_v32 = vsub.f32 %v3125_v6, %v3147_v7  ;;  %3193 = vmatmul.f32.vlgmr.msra.gmra.mxu3 %v3147_v7 }
 0xda3   :  { %v3149_v14 = vand.u32 4294901760, %v3148_v32  ;;  %3223 = vmatmul.f32.vlgmr.msrb.gmra.mxu0 %v3148_v32 }
 0xda5   :  { %v3150_v45 = vsub.f32 %v3148_v32, %v3149_v14  ;;  %3250 = vmatmul.f32.vlgmr.msrb.gmra.mxu1 %v3149_v14 }
 0xda7   :  { %v3151_v17 = vand.u32 4294901760, %v3150_v45 }
 0xda9   :  { %3152 = vmatmul.f32.vlgmr.msra.gmra.mxu2 %v3151_v17  ;;  %3308 = vmatmul.f32.vlgmr.msrb.gmra.mxu3 %v3147_v7 }
 0xdb1   :  { %3283 = vmatmul.f32.vlgmr.msrb.gmra.mxu2 %v3147_v7 }
 0xe20   :  { %v3224_v3 = vpop.f32.mrf.mxu0 }
 0xe22   :  { %v3251_v5 = vpop.f32.mrf.mxu1 }
 0xe24   :  { %v3194_v21 = vpop.f32.mrf.mxu3 }
 0xe2c   :  { %v3153_v23 = vpop.f32.mrf.mxu2  ;;  %v3309_v12 = vpop.f32.mrf.mxu3 }
 0xe2d   :  { %v3154_v9 = vadd.f32 %v3927_v44, %v3153_v23 }
 0xe2f   :  { %v3195_v24 = vadd.f32 %v3194_v21, %v3154_v9 }
 0xe31   :  { %v3225_v4 = vadd.f32 %v3224_v3, %v3195_v24 }
 0xe33   :  { %v3252_v8 = vadd.f32 %v3251_v5, %v3225_v4 }
 0xe34   :  { %v3284_v10 = vpop.f32.mrf.mxu2 }
 0xe35   :  { %v3285_v11 = vadd.f32 %v3284_v10, %v3252_v8 }
 0xe37   :  { %v3310_v13 = vadd.f32 %v3309_v12, %v3285_v11 }
 0xe39   :  { %3392 = vtanh.f32 %v3310_v13 }
 0xe3f   :  { %v3393_v16 = vpop.eup %3392 }
 0xe40   :  { %v3315_v19 = vmul.f32 %v3393_v16, %v3116_v0 }
 0xe42   :  { %v3316_v56 = vadd.f32 %v3315_v19, %v3314_v18 }
 0xe44   :  { %3317 = vst.msk [vmem:[%s4106_s5] sm:$0xf] %vm440_vm5, %v3316_v56 }

</bundles_post_ra>
